<compile_context>
chip_gen: v5e
topology: v5e:2x2
jax: 0.10.0
libtpu: 0.0.40
codegen_flags: <defaults>
</compile_context>

<pallas_src>
import functools
import numpy as np

import jax
import jax.numpy as jnp
from jax import lax
from jax.experimental import pallas as pl
from jax.experimental.pallas import tpu as pltpu


# ----------------------------------------------------------------------------
# Trace-time constant builders (tiny 0/1 numpy matrices / masks)
# ----------------------------------------------------------------------------
def _conv_tap_masks(B, H, W, lanes):
    """[9, 1, lanes] 0/1; mask[t, 0, p]=1 iff output position p has an in-bounds
    source for tap t (zero padding is realised by zeroing the rolled copy)."""
    m = np.zeros((9, 1, lanes), np.float32)
    for t in range(9):
        dy, dx = t // 3 - 1, t % 3 - 1
        for b in range(B):
            for i in range(H):
                for j in range(W):
                    if 0 <= i + dy < H and 0 <= j + dx < W:
                        m[t, 0, b * H * W + i * W + j] = 1.0
    return m


def _pool_select(B, H, W, lanes):
    """[lanes, lanes] 0/1: picks the top-left corner of every 2x2 window and
    compacts (b, io, jo) onto output lane b*(H/2)*(W/2) + io*(W/2) + jo."""
    P = np.zeros((lanes, lanes), np.float32)
    Ho, Wo = H // 2, W // 2
    for b in range(B):
        for io in range(Ho):
            for jo in range(Wo):
                P[b * H * W + 2 * io * W + 2 * jo, b * Ho * Wo + io * Wo + jo] = 1.0
    return P


def _fc_select(B, S, lanes):
    """[S, lanes, B] 0/1; Q[s][b*S+s, b] = 1 (per-batch spatial pick for fc1)."""
    Q = np.zeros((S, lanes, B), np.float32)
    for s in range(S):
        for b in range(B):
            Q[s, b * S + s, b] = 1.0
    return Q


# ----------------------------------------------------------------------------
# The single fused Pallas kernel
# ----------------------------------------------------------------------------
def _opnn_fused_kernel(
    cols1_ref,   # [4, 9, 128]  bf16  quadrant-grouped conv1 im2col
    w1_ref,      # [16, 9]      bf16
    w2_ref,      # [32, 144]    bf16  conv2 weights, columns ordered (tap, cin)
    w3_ref,      # [64, 288]    bf16  conv3 weights, columns ordered (tap, cin)
    wfc_ref,     # [32, 256]    bf16  fc1 weights, columns ordered (spatial, chan)
    masks_ref,   # [18, 1, 128] f32   9 conv2 tap masks then 9 conv3 tap masks
    p2_ref,      # [128, 128]   bf16  pool2 corner-selection / lane compaction
    p3_ref,      # [128, 128]   bf16  pool3 corner-selection / lane compaction
    qfc_ref,     # [S, 128, B]  bf16  per-spatial-position selection for fc1
    bias_ref,    # [sum, 1]     f32   all biases packed
    mlpw_ref,    # [6*32, 32]   f32   branch2 + trunk weights packed (zero-padded)
    src_ref,     # [32, B]      f32   source_loc.T zero-padded on rows
    crd_ref,     # [32, K]      f32   coords.T zero-padded on rows
    out_ref,     # [B, K]       f32
    *,
    w_conv2, w_conv3, n_spatial, bias_layout, mlp_layout, lanes,
):
    bf16 = jnp.bfloat16

    def mm(a, b):
        return jnp.dot(a, b, preferred_element_type=jnp.float32)

    def bias(i):
        off, n = bias_layout[i]
        return bias_ref[pl.ds(off, n), :]

    def wmlp(i):
        off, n = mlp_layout[i]
        return mlpw_ref[pl.ds(off, n), :]

    def conv_cols(x, w_img, masks_base):
        # 9 lane-rolled + boundary-masked tap copies of x, stacked on sublanes.
        taps = []
        for t in range(9):
            dy, dx = t // 3 - 1, t % 3 - 1
            s = dy * w_img + dx
            shifted = pltpu.roll(x, (-s) % lanes, axis=1) if s != 0 else x
            taps.append(shifted * masks_ref[masks_base + t])
        return jnp.concatenate(taps, axis=0).astype(bf16)

    def pool_max(x, w_img):
        # max over the 4 corners of every 2x2 window (valid at even (i, j) lanes).
        r1 = pltpu.roll(x, lanes - 1, axis=1)
        r2 = pltpu.roll(x, lanes - w_img, axis=1)
        r3 = pltpu.roll(x, lanes - w_img - 1, axis=1)
        return jnp.maximum(jnp.maximum(x, r1), jnp.maximum(r2, r3))

    # ---- conv1 (3x3, pad 1) fused with pool1: 4 independent quadrant matmuls,
    #      tree max, bias, ReLU.  Feature-major [16, 128]. ---------------------
    w1 = w1_ref[...]
    q0 = mm(w1, cols1_ref[0])
    q1 = mm(w1, cols1_ref[1])
    q2 = mm(w1, cols1_ref[2])
    q3 = mm(w1, cols1_ref[3])
    a1 = jnp.maximum(
        jnp.maximum(jnp.maximum(q0, q1), jnp.maximum(q2, q3)) + bias(0), 0.0)

    # ---- conv2: rolls + masks -> ONE deep-K matmul  [32,144]@[144,128] -------
    cols2 = conv_cols(a1, w_conv2, 0)
    a2 = jnp.maximum(mm(w2_ref[...], cols2) + bias(1), 0.0)          # [32, 128]

    # ---- pool2: rolled-corner max + one 0/1 selection matmul -----------------
    a2p = mm(pool_max(a2, w_conv2).astype(bf16), p2_ref[...])        # [32,128], lanes>=32 are 0

    # ---- conv3: [64,288]@[288,128] --------------------------------------------
    cols3 = conv_cols(a2p, w_conv3, 9)
    a3 = jnp.maximum(mm(w3_ref[...], cols3) + bias(2), 0.0)          # [64, 128]

    # ---- pool3 ----------------------------------------------------------------
    a3p = mm(pool_max(a3, w_conv3).astype(bf16), p3_ref[...])        # [64,128], lanes>=8 are 0
    a3pb = a3p.astype(bf16)

    # ---- fc1: S independent spatial selections, sublane-stack, one K=256 matmul
    sels = [mm(a3pb, qfc_ref[s]) for s in range(n_spatial)]          # each [64, B]
    stacked = jnp.concatenate(sels, axis=0).astype(bf16)             # [64*S, B]
    y_br1 = jnp.maximum(mm(wfc_ref[...], stacked) + bias(3), 0.0)    # [32, B]

    # ---- branch-2 MLP (f32, feature-major) ------------------------------------
    h = jnp.maximum(mm(wmlp(0), src_ref[...]) + bias(4), 0.0)
    h = jnp.maximum(mm(wmlp(1), h) + bias(5), 0.0)
    y_br2 = mm(wmlp(2), h) + bias(6)                                 # [32, B]

    # ---- trunk MLP (tanh, f32, feature-major: coords on lanes) ----------------
    th = jnp.tanh(mm(wmlp(3), crd_ref[...]) + bias(7))
    th = jnp.tanh(mm(wmlp(4), th) + bias(8))
    y_tr = mm(wmlp(5), th) + bias(9)                                 # [32, K]

    # ---- combine, emitted batch-major [B, K] (K lane-dense):
    #      out[b, k] = sum_j (y_br1 * y_br2)[j, b] * y_tr[j, k]
    out_ref[...] = lax.dot_general(
        y_br1 * y_br2, y_tr,
        dimension_numbers=(((0,), (0,)), ((), ())),
        preferred_element_type=jnp.float32)


# ----------------------------------------------------------------------------
# Forward wrapper (single pallas_call, everything VMEM-resident)
# ----------------------------------------------------------------------------
def opnn_forward(params, geometry, source_loc, coords):
    B, _, H, W = geometry.shape
    K = coords.shape[0]
    Hp1, Wp1 = H // 2, W // 2          # conv2 / pool2 resolution
    Hp2, Wp2 = Hp1 // 2, Wp1 // 2      # conv3 / pool3 resolution
    Hp3, Wp3 = Hp2 // 2, Wp2 // 2
    S = Hp3 * Wp3
    lanes = B * Hp1 * Wp1
    if lanes != 128:
        raise NotImplementedError(
            "fused kernel is specialised to B*(H/2)*(W/2) == 128 lanes "
            f"(got {lanes}); tile the lane axis to generalise")

    bf16 = jnp.bfloat16

    # ---- conv1 im2col on the input, grouped by 2x2-pool quadrant (tiny, trace
    #      time strided slices; fuses pool1 into conv1) -------------------------
    xp = jnp.pad(geometry[:, 0], ((0, 0), (1, 1), (1, 1)))
    quads = []
    for q in range(4):
        u, v = divmod(q, 2)
        taps = []
        for t in range(9):
            ky, kx = divmod(t, 3)
            sub = xp[:, u + ky:u + ky + H:2, v + kx:v + kx + W:2]
            taps.append(sub.reshape(B * Hp1 * Wp1))
        quads.append(jnp.stack(taps))
    cols1q = jnp.stack(quads).astype(bf16)                       # [4, 9, 128]

    # ---- baked 0/1 constants ---------------------------------------------------
    masks = jnp.asarray(np.concatenate([
        _conv_tap_masks(B, Hp1, Wp1, lanes),
        _conv_tap_masks(B, Hp2, Wp2, lanes)], axis=0))           # [18, 1, 128] f32
    p2sel = jnp.asarray(_pool_select(B, Hp1, Wp1, lanes)).astype(bf16)
    p3sel = jnp.asarray(_pool_select(B, Hp2, Wp2, lanes)).astype(bf16)
    qfc = jnp.asarray(_fc_select(B, S, lanes)).astype(bf16)      # [S, 128, B]

    # ---- weight repacking (torch layouts -> kernel layouts, bf16 MXU inputs) ----
    c1, c2, c3 = params["conv1_w"], params["conv2_w"], params["conv3_w"]
    w1 = c1.reshape(c1.shape[0], 9).astype(bf16)                               # [16, 9]
    w2 = c2.transpose(0, 2, 3, 1).reshape(c2.shape[0], 9 * c2.shape[1]).astype(bf16)
    w3 = c3.transpose(0, 2, 3, 1).reshape(c3.shape[0], 9 * c3.shape[1]).astype(bf16)
    fc_w = params["fc1_w"]                                                     # [32, 64*S]
    wfc = fc_w.reshape(fc_w.shape[0], -1, S).transpose(0, 2, 1).reshape(
        fc_w.shape[0], -1).astype(bf16)                                        # cols (s, c)

    # ---- packed biases + packed f32 MLP weights (fewer operands / DMAs) --------
    bias_parts = [params["conv1_b"], params["conv2_b"], params["conv3_b"],
                  params["fc1_b"], params["b2_b0"], params["b2_b1"],
                  params["b2_b2"], params["tr_b0"], params["tr_b1"],
                  params["tr_b2"]]
    bias_sizes = [int(b.shape[0]) for b in bias_parts]
    bias_offs = [int(x) for x in np.cumsum([0] + bias_sizes[:-1])]
    bias_layout = tuple(zip(bias_offs, bias_sizes))
    biases = jnp.concatenate(bias_parts).reshape(-1, 1).astype(jnp.float32)

    hid = params["b2_w1"].shape[1]                               # 32

    def padw(w):
        return jnp.pad(w, ((0, 0), (0, hid - w.shape[1])))

    mlp_parts = [padw(params["b2_w0"]), params["b2_w1"], params["b2_w2"],
                 padw(params["tr_w0"]), params["tr_w1"], params["tr_w2"]]
    mlp_sizes = [int(w.shape[0]) for w in mlp_parts]
    mlp_offs = [int(x) for x in np.cumsum([0] + mlp_sizes[:-1])]
    mlp_layout = tuple(zip(mlp_offs, mlp_sizes))
    mlpw = jnp.concatenate(mlp_parts, axis=0).astype(jnp.float32)

    src_fm = jnp.pad(source_loc.T, ((0, hid - source_loc.shape[1]), (0, 0)))
    crd_fm = jnp.pad(coords.T, ((0, hid - coords.shape[1]), (0, 0)))

    operands = (cols1q, w1, w2, w3, wfc, masks, p2sel, p3sel, qfc,
                biases, mlpw, src_fm, crd_fm)

    # ---- cost estimate from the actual shapes ----------------------------------
    C1, C2, C3 = c1.shape[0], c2.shape[0], c3.shape[0]
    macs = (4 * C1 * 9 * lanes + C2 * 9 * C1 * lanes + C2 * lanes * lanes
            + C3 * 9 * C2 * lanes + C3 * lanes * lanes
            + S * C3 * lanes * B + wfc.shape[0] * wfc.shape[1] * B
            + 3 * hid * hid * B + 3 * hid * hid * K + hid * B * K)
    bytes_accessed = sum(int(np.prod(a.shape)) * a.dtype.itemsize
                         for a in operands) + B * K * 4
    cost = pl.CostEstimate(flops=int(2 * macs),
                           transcendentals=int(2 * hid * K),
                           bytes_accessed=int(bytes_accessed))

    kernel = functools.partial(
        _opnn_fused_kernel,
        w_conv2=Wp1, w_conv3=Wp2, n_spatial=S,
        bias_layout=bias_layout, mlp_layout=mlp_layout, lanes=lanes)

    vspec = pl.BlockSpec(memory_space=pltpu.MemorySpace.VMEM)
    # NOTE(v7x): for large n_coords add grid=(K//tk,) with
    # dimension_semantics=("parallel",) so trunk/combine work shards across both
    # TensorCores; at K=8 a grid would be pure overhead.
    return pl.pallas_call(
        kernel,
        out_shape=jax.ShapeDtypeStruct((B, K), jnp.float32),
        in_specs=[vspec] * len(operands),
        out_specs=vspec,
        cost_estimate=cost,
    )(*operands)                                                  # [B, K]


# ----------------------------------------------------------------------------
# Plain-JAX reference (mirrors the PyTorch module) for a numerical self-check
# ----------------------------------------------------------------------------
def reference_forward(params, geometry, source_loc, coords):
    def conv_relu(x, w, b):
        y = lax.conv_general_dilated(
            x, w, window_strides=(1, 1), padding=((1, 1), (1, 1)),
            dimension_numbers=("NCHW", "OIHW", "NCHW"))
        return jnp.maximum(y + b[None, :, None, None], 0.0)

    def pool(x):
        return lax.reduce_window(x, -jnp.inf, lax.max,
                                 (1, 1, 2, 2), (1, 1, 2, 2), "VALID")

    def linear(x, w, b):
        return x @ w.T + b

    x = pool(conv_relu(geometry, params["conv1_w"], params["conv1_b"]))
    x = pool(conv_relu(x, params["conv2_w"], params["conv2_b"]))
    x = pool(conv_relu(x, params["conv3_w"], params["conv3_b"]))
    x = x.reshape(x.shape[0], -1)
    y_br1 = jnp.maximum(linear(x, params["fc1_w"], params["fc1_b"]), 0.0)

    h = jnp.maximum(linear(source_loc, params["b2_w0"], params["b2_b0"]), 0.0)
    h = jnp.maximum(linear(h, params["b2_w1"], params["b2_b1"]), 0.0)
    y_br2 = linear(h, params["b2_w2"], params["b2_b2"])

    t = jnp.tanh(linear(coords, params["tr_w0"], params["tr_b0"]))
    t = jnp.tanh(linear(t, params["tr_w1"], params["tr_b1"]))
    y_tr = linear(t, params["tr_w2"], params["tr_b2"])

    return (y_br1 * y_br2) @ y_tr.T


# ----------------------------------------------------------------------------
# Deterministic parameter init (torch layouts: conv [O,I,3,3], linear [out,in])
# ----------------------------------------------------------------------------
def init_params(key, branch1_dim, branch2_dim, trunk_dim, geometry_dim):
    def nxt():
        nonlocal key
        key, sub = jax.random.split(key)
        return sub

    def lin(in_d, out_d):
        s = 1.0 / jnp.sqrt(jnp.float32(in_d))
        return (jax.random.normal(nxt(), (out_d, in_d), jnp.float32) * s,
                jax.random.normal(nxt(), (out_d,), jnp.float32) * s)

    def conv(cin, cout):
        s = 1.0 / jnp.sqrt(jnp.float32(cin * 9))
        return (jax.random.normal(nxt(), (cout, cin, 3, 3), jnp.float32) * s,
                jax.random.normal(nxt(), (cout,), jnp.float32) * s)

    p = {}
    p["conv1_w"], p["conv1_b"] = conv(1, 16)
    p["conv2_w"], p["conv2_b"] = conv(16, 32)
    p["conv3_w"], p["conv3_b"] = conv(32, 64)
    fc_in = 64 * (geometry_dim // 8) * (geometry_dim // 8)
    p["fc1_w"], p["fc1_b"] = lin(fc_in, branch1_dim[-1])
    p["b2_w0"], p["b2_b0"] = lin(branch2_dim[0], branch2_dim[1])
    p["b2_w1"], p["b2_b1"] = lin(branch2_dim[1], branch2_dim[2])
    p["b2_w2"], p["b2_b2"] = lin(branch2_dim[2], branch2_dim[-1])
    p["tr_w0"], p["tr_b0"] = lin(trunk_dim[0], trunk_dim[1])
    p["tr_w1"], p["tr_b1"] = lin(trunk_dim[1], trunk_dim[2])
    p["tr_w2"], p["tr_b2"] = lin(trunk_dim[2], trunk_dim[-1])
    return p


if __name__ == "__main__":
    B, geometry_dim, n_coords = 2, 16, 8
    branch1_dim = [256, 64, 32]
    branch2_dim = [3, 32, 32, 32]
    trunk_dim = [2, 32, 32, 32]

    key = jax.random.PRNGKey(0)
    kp, kg, ks, kc = jax.random.split(key, 4)
    params = init_params(kp, branch1_dim, branch2_dim, trunk_dim, geometry_dim)

    geometry = jax.random.normal(kg, (B, 1, geometry_dim, geometry_dim), jnp.float32)
    source_loc = jax.random.normal(ks, (B, branch2_dim[0]), jnp.float32)
    coords = jax.random.normal(kc, (n_coords, trunk_dim[0]), jnp.float32)

    fwd = jax.jit(opnn_forward)
    y_out = fwd(params, geometry, source_loc, coords)
    jax.block_until_ready(y_out)
    assert y_out.shape == (B, n_coords) and y_out.dtype == jnp.float32

    # Self-check vs the f32 plain-JAX reference of the torch module.  Tolerance is
    # sized for the bf16 MXU-operand path (f32 accumulation); any layout/semantic
    # bug produces O(1) relative error and still fails this check.
    y_ref = reference_forward(params, geometry, source_loc, coords)
    rel_err = jnp.linalg.norm(y_out - y_ref) / (jnp.linalg.norm(y_ref) + 1e-12)
    assert float(rel_err) < 2e-2, f"relative error too large: {float(rel_err)}"

    print("KERNEL_OK")
</pallas_src>

<mosaic_0001>
module attributes {stable_mosaic.version = 11 : i64} {
  func.func @_opnn_fused_kernel(%arg0: memref<4x9x128xbf16, #tpu.memory_space<vmem>>, %arg1: memref<16x9xbf16, #tpu.memory_space<vmem>>, %arg2: memref<32x144xbf16, #tpu.memory_space<vmem>>, %arg3: memref<64x288xbf16, #tpu.memory_space<vmem>>, %arg4: memref<32x256xbf16, #tpu.memory_space<vmem>>, %arg5: memref<18x1x128xf32, #tpu.memory_space<vmem>>, %arg6: memref<128x128xbf16, #tpu.memory_space<vmem>>, %arg7: memref<128x128xbf16, #tpu.memory_space<vmem>>, %arg8: memref<4x128x2xbf16, #tpu.memory_space<vmem>>, %arg9: memref<336x1xf32, #tpu.memory_space<vmem>>, %arg10: memref<192x32xf32, #tpu.memory_space<vmem>>, %arg11: memref<32x2xf32, #tpu.memory_space<vmem>>, %arg12: memref<32x8xf32, #tpu.memory_space<vmem>>, %arg13: memref<2x8xf32, #tpu.memory_space<vmem>>) attributes {dimension_semantics = [], scalar_prefetch = 0 : i64, scratch_operands = 0 : i64, tpu.core_type = #tpu.core_type<tc>} {
    %c0 = arith.constant 0 : index
    %c0_0 = arith.constant 0 : index
    %0 = vector.load %arg1[%c0, %c0_0] : memref<16x9xbf16, #tpu.memory_space<vmem>>, vector<16x9xbf16>
    %c0_1 = arith.constant 0 : index
    %c0_2 = arith.constant 0 : index
    %c0_3 = arith.constant 0 : index
    %1 = vector.load %arg0[%c0_1, %c0_2, %c0_3] : memref<4x9x128xbf16, #tpu.memory_space<vmem>>, vector<1x9x128xbf16>
    %2 = vector.shape_cast %1 : vector<1x9x128xbf16> to vector<9x128xbf16>
    %cst = arith.constant dense<0.000000e+00> : vector<16x128xf32>
    %3 = tpu.matmul %0, %2, %cst {dimension_numbers = #tpu.dot_dimension_numbers<[1], [0], [0], [1], [0, 0, 1, 1], [], []>} : vector<16x9xbf16>, vector<9x128xbf16>, vector<16x128xf32> -> vector<16x128xf32>
    %c1 = arith.constant 1 : index
    %c0_4 = arith.constant 0 : index
    %c0_5 = arith.constant 0 : index
    %4 = vector.load %arg0[%c1, %c0_4, %c0_5] : memref<4x9x128xbf16, #tpu.memory_space<vmem>>, vector<1x9x128xbf16>
    %5 = vector.shape_cast %4 : vector<1x9x128xbf16> to vector<9x128xbf16>
    %cst_6 = arith.constant dense<0.000000e+00> : vector<16x128xf32>
    %6 = tpu.matmul %0, %5, %cst_6 {dimension_numbers = #tpu.dot_dimension_numbers<[1], [0], [0], [1], [0, 0, 1, 1], [], []>} : vector<16x9xbf16>, vector<9x128xbf16>, vector<16x128xf32> -> vector<16x128xf32>
    %c2 = arith.constant 2 : index
    %c0_7 = arith.constant 0 : index
    %c0_8 = arith.constant 0 : index
    %7 = vector.load %arg0[%c2, %c0_7, %c0_8] : memref<4x9x128xbf16, #tpu.memory_space<vmem>>, vector<1x9x128xbf16>
    %8 = vector.shape_cast %7 : vector<1x9x128xbf16> to vector<9x128xbf16>
    %cst_9 = arith.constant dense<0.000000e+00> : vector<16x128xf32>
    %9 = tpu.matmul %0, %8, %cst_9 {dimension_numbers = #tpu.dot_dimension_numbers<[1], [0], [0], [1], [0, 0, 1, 1], [], []>} : vector<16x9xbf16>, vector<9x128xbf16>, vector<16x128xf32> -> vector<16x128xf32>
    %c3 = arith.constant 3 : index
    %c0_10 = arith.constant 0 : index
    %c0_11 = arith.constant 0 : index
    %10 = vector.load %arg0[%c3, %c0_10, %c0_11] : memref<4x9x128xbf16, #tpu.memory_space<vmem>>, vector<1x9x128xbf16>
    %11 = vector.shape_cast %10 : vector<1x9x128xbf16> to vector<9x128xbf16>
    %cst_12 = arith.constant dense<0.000000e+00> : vector<16x128xf32>
    %12 = tpu.matmul %0, %11, %cst_12 {dimension_numbers = #tpu.dot_dimension_numbers<[1], [0], [0], [1], [0, 0, 1, 1], [], []>} : vector<16x9xbf16>, vector<9x128xbf16>, vector<16x128xf32> -> vector<16x128xf32>
    %13 = arith.maximumf %3, %6 : vector<16x128xf32>
    %14 = arith.maximumf %9, %12 : vector<16x128xf32>
    %15 = arith.maximumf %13, %14 : vector<16x128xf32>
    %c0_13 = arith.constant 0 : index
    %c0_14 = arith.constant 0 : index
    %16 = vector.load %arg9[%c0_13, %c0_14] : memref<336x1xf32, #tpu.memory_space<vmem>>, vector<16x1xf32>
    %17 = vector.broadcast %16 : vector<16x1xf32> to vector<16x128xf32>
    %18 = arith.addf %15, %17 : vector<16x128xf32>
    %cst_15 = arith.constant 0.000000e+00 : f32
    %19 = vector.broadcast %cst_15 : f32 to vector<16x128xf32>
    %20 = arith.maximumf %18, %19 : vector<16x128xf32>
    %c9_i32 = arith.constant 9 : i32
    %21 = tpu.dynamic_rotate %20 by %c9_i32 dim 1 : vector<16x128xf32>, i32 -> vector<16x128xf32>
    %c0_16 = arith.constant 0 : index
    %c0_17 = arith.constant 0 : index
    %c0_18 = arith.constant 0 : index
    %22 = vector.load %arg5[%c0_16, %c0_17, %c0_18] : memref<18x1x128xf32, #tpu.memory_space<vmem>>, vector<1x1x128xf32>
    %23 = vector.shape_cast %22 : vector<1x1x128xf32> to vector<1x128xf32>
    %24 = vector.broadcast %23 : vector<1x128xf32> to vector<16x128xf32>
    %25 = arith.mulf %21, %24 : vector<16x128xf32>
    %c8_i32 = arith.constant 8 : i32
    %26 = tpu.dynamic_rotate %20 by %c8_i32 dim 1 : vector<16x128xf32>, i32 -> vector<16x128xf32>
    %c1_19 = arith.constant 1 : index
    %c0_20 = arith.constant 0 : index
    %c0_21 = arith.constant 0 : index
    %27 = vector.load %arg5[%c1_19, %c0_20, %c0_21] : memref<18x1x128xf32, #tpu.memory_space<vmem>>, vector<1x1x128xf32>
    %28 = vector.shape_cast %27 : vector<1x1x128xf32> to vector<1x128xf32>
    %29 = vector.broadcast %28 : vector<1x128xf32> to vector<16x128xf32>
    %30 = arith.mulf %26, %29 : vector<16x128xf32>
    %c7_i32 = arith.constant 7 : i32
    %31 = tpu.dynamic_rotate %20 by %c7_i32 dim 1 : vector<16x128xf32>, i32 -> vector<16x128xf32>
    %c2_22 = arith.constant 2 : index
    %c0_23 = arith.constant 0 : index
    %c0_24 = arith.constant 0 : index
    %32 = vector.load %arg5[%c2_22, %c0_23, %c0_24] : memref<18x1x128xf32, #tpu.memory_space<vmem>>, vector<1x1x128xf32>
    %33 = vector.shape_cast %32 : vector<1x1x128xf32> to vector<1x128xf32>
    %34 = vector.broadcast %33 : vector<1x128xf32> to vector<16x128xf32>
    %35 = arith.mulf %31, %34 : vector<16x128xf32>
    %c1_i32 = arith.constant 1 : i32
    %36 = tpu.dynamic_rotate %20 by %c1_i32 dim 1 : vector<16x128xf32>, i32 -> vector<16x128xf32>
    %c3_25 = arith.constant 3 : index
    %c0_26 = arith.constant 0 : index
    %c0_27 = arith.constant 0 : index
    %37 = vector.load %arg5[%c3_25, %c0_26, %c0_27] : memref<18x1x128xf32, #tpu.memory_space<vmem>>, vector<1x1x128xf32>
    %38 = vector.shape_cast %37 : vector<1x1x128xf32> to vector<1x128xf32>
    %39 = vector.broadcast %38 : vector<1x128xf32> to vector<16x128xf32>
    %40 = arith.mulf %36, %39 : vector<16x128xf32>
    %c4 = arith.constant 4 : index
    %c0_28 = arith.constant 0 : index
    %c0_29 = arith.constant 0 : index
    %41 = vector.load %arg5[%c4, %c0_28, %c0_29] : memref<18x1x128xf32, #tpu.memory_space<vmem>>, vector<1x1x128xf32>
    %42 = vector.shape_cast %41 : vector<1x1x128xf32> to vector<1x128xf32>
    %43 = vector.broadcast %42 : vector<1x128xf32> to vector<16x128xf32>
    %44 = arith.mulf %20, %43 : vector<16x128xf32>
    %c127_i32 = arith.constant 127 : i32
    %45 = tpu.dynamic_rotate %20 by %c127_i32 dim 1 : vector<16x128xf32>, i32 -> vector<16x128xf32>
    %c5 = arith.constant 5 : index
    %c0_30 = arith.constant 0 : index
    %c0_31 = arith.constant 0 : index
    %46 = vector.load %arg5[%c5, %c0_30, %c0_31] : memref<18x1x128xf32, #tpu.memory_space<vmem>>, vector<1x1x128xf32>
    %47 = vector.shape_cast %46 : vector<1x1x128xf32> to vector<1x128xf32>
    %48 = vector.broadcast %47 : vector<1x128xf32> to vector<16x128xf32>
    %49 = arith.mulf %45, %48 : vector<16x128xf32>
    %c121_i32 = arith.constant 121 : i32
    %50 = tpu.dynamic_rotate %20 by %c121_i32 dim 1 : vector<16x128xf32>, i32 -> vector<16x128xf32>
    %c6 = arith.constant 6 : index
    %c0_32 = arith.constant 0 : index
    %c0_33 = arith.constant 0 : index
    %51 = vector.load %arg5[%c6, %c0_32, %c0_33] : memref<18x1x128xf32, #tpu.memory_space<vmem>>, vector<1x1x128xf32>
    %52 = vector.shape_cast %51 : vector<1x1x128xf32> to vector<1x128xf32>
    %53 = vector.broadcast %52 : vector<1x128xf32> to vector<16x128xf32>
    %54 = arith.mulf %50, %53 : vector<16x128xf32>
    %c120_i32 = arith.constant 120 : i32
    %55 = tpu.dynamic_rotate %20 by %c120_i32 dim 1 : vector<16x128xf32>, i32 -> vector<16x128xf32>
    %c7 = arith.constant 7 : index
    %c0_34 = arith.constant 0 : index
    %c0_35 = arith.constant 0 : index
    %56 = vector.load %arg5[%c7, %c0_34, %c0_35] : memref<18x1x128xf32, #tpu.memory_space<vmem>>, vector<1x1x128xf32>
    %57 = vector.shape_cast %56 : vector<1x1x128xf32> to vector<1x128xf32>
    %58 = vector.broadcast %57 : vector<1x128xf32> to vector<16x128xf32>
    %59 = arith.mulf %55, %58 : vector<16x128xf32>
    %c119_i32 = arith.constant 119 : i32
    %60 = tpu.dynamic_rotate %20 by %c119_i32 dim 1 : vector<16x128xf32>, i32 -> vector<16x128xf32>
    %c8 = arith.constant 8 : index
    %c0_36 = arith.constant 0 : index
    %c0_37 = arith.constant 0 : index
    %61 = vector.load %arg5[%c8, %c0_36, %c0_37] : memref<18x1x128xf32, #tpu.memory_space<vmem>>, vector<1x1x128xf32>
    %62 = vector.shape_cast %61 : vector<1x1x128xf32> to vector<1x128xf32>
    %63 = vector.broadcast %62 : vector<1x128xf32> to vector<16x128xf32>
    %64 = arith.mulf %60, %63 : vector<16x128xf32>
    %65 = tpu.concatenate %25, %30, %35, %40, %44, %49, %54, %59, %64 in 0 : vector<16x128xf32>, vector<16x128xf32>, vector<16x128xf32>, vector<16x128xf32>, vector<16x128xf32>, vector<16x128xf32>, vector<16x128xf32>, vector<16x128xf32>, vector<16x128xf32> -> vector<144x128xf32>
    %66 = arith.truncf %65 : vector<144x128xf32> to vector<144x128xbf16>
    %c0_38 = arith.constant 0 : index
    %c0_39 = arith.constant 0 : index
    %67 = vector.load %arg2[%c0_38, %c0_39] : memref<32x144xbf16, #tpu.memory_space<vmem>>, vector<32x144xbf16>
    %cst_40 = arith.constant dense<0.000000e+00> : vector<32x128xf32>
    %68 = tpu.matmul %67, %66, %cst_40 {dimension_numbers = #tpu.dot_dimension_numbers<[1], [0], [0], [1], [0, 0, 1, 1], [], []>} : vector<32x144xbf16>, vector<144x128xbf16>, vector<32x128xf32> -> vector<32x128xf32>
    %c16 = arith.constant 16 : index
    %c0_41 = arith.constant 0 : index
    %69 = vector.load %arg9[%c16, %c0_41] : memref<336x1xf32, #tpu.memory_space<vmem>>, vector<32x1xf32>
    %70 = vector.broadcast %69 : vector<32x1xf32> to vector<32x128xf32>
    %71 = arith.addf %68, %70 : vector<32x128xf32>
    %cst_42 = arith.constant 0.000000e+00 : f32
    %72 = vector.broadcast %cst_42 : f32 to vector<32x128xf32>
    %73 = arith.maximumf %71, %72 : vector<32x128xf32>
    %c127_i32_43 = arith.constant 127 : i32
    %74 = tpu.dynamic_rotate %73 by %c127_i32_43 dim 1 : vector<32x128xf32>, i32 -> vector<32x128xf32>
    %c120_i32_44 = arith.constant 120 : i32
    %75 = tpu.dynamic_rotate %73 by %c120_i32_44 dim 1 : vector<32x128xf32>, i32 -> vector<32x128xf32>
    %c119_i32_45 = arith.constant 119 : i32
    %76 = tpu.dynamic_rotate %73 by %c119_i32_45 dim 1 : vector<32x128xf32>, i32 -> vector<32x128xf32>
    %77 = arith.maximumf %73, %74 : vector<32x128xf32>
    %78 = arith.maximumf %75, %76 : vector<32x128xf32>
    %79 = arith.maximumf %77, %78 : vector<32x128xf32>
    %80 = arith.truncf %79 : vector<32x128xf32> to vector<32x128xbf16>
    %c0_46 = arith.constant 0 : index
    %c0_47 = arith.constant 0 : index
    %81 = vector.load %arg6[%c0_46, %c0_47] : memref<128x128xbf16, #tpu.memory_space<vmem>>, vector<128x128xbf16>
    %cst_48 = arith.constant dense<0.000000e+00> : vector<32x128xf32>
    %82 = tpu.matmul %80, %81, %cst_48 {dimension_numbers = #tpu.dot_dimension_numbers<[1], [0], [0], [1], [0, 0, 1, 1], [], []>} : vector<32x128xbf16>, vector<128x128xbf16>, vector<32x128xf32> -> vector<32x128xf32>
    %c5_i32 = arith.constant 5 : i32
    %83 = tpu.dynamic_rotate %82 by %c5_i32 dim 1 : vector<32x128xf32>, i32 -> vector<32x128xf32>
    %c9 = arith.constant 9 : index
    %c0_49 = arith.constant 0 : index
    %c0_50 = arith.constant 0 : index
    %84 = vector.load %arg5[%c9, %c0_49, %c0_50] : memref<18x1x128xf32, #tpu.memory_space<vmem>>, vector<1x1x128xf32>
    %85 = vector.shape_cast %84 : vector<1x1x128xf32> to vector<1x128xf32>
    %86 = vector.broadcast %85 : vector<1x128xf32> to vector<32x128xf32>
    %87 = arith.mulf %83, %86 : vector<32x128xf32>
    %c4_i32 = arith.constant 4 : i32
    %88 = tpu.dynamic_rotate %82 by %c4_i32 dim 1 : vector<32x128xf32>, i32 -> vector<32x128xf32>
    %c10 = arith.constant 10 : index
    %c0_51 = arith.constant 0 : index
    %c0_52 = arith.constant 0 : index
    %89 = vector.load %arg5[%c10, %c0_51, %c0_52] : memref<18x1x128xf32, #tpu.memory_space<vmem>>, vector<1x1x128xf32>
    %90 = vector.shape_cast %89 : vector<1x1x128xf32> to vector<1x128xf32>
    %91 = vector.broadcast %90 : vector<1x128xf32> to vector<32x128xf32>
    %92 = arith.mulf %88, %91 : vector<32x128xf32>
    %c3_i32 = arith.constant 3 : i32
    %93 = tpu.dynamic_rotate %82 by %c3_i32 dim 1 : vector<32x128xf32>, i32 -> vector<32x128xf32>
    %c11 = arith.constant 11 : index
    %c0_53 = arith.constant 0 : index
    %c0_54 = arith.constant 0 : index
    %94 = vector.load %arg5[%c11, %c0_53, %c0_54] : memref<18x1x128xf32, #tpu.memory_space<vmem>>, vector<1x1x128xf32>
    %95 = vector.shape_cast %94 : vector<1x1x128xf32> to vector<1x128xf32>
    %96 = vector.broadcast %95 : vector<1x128xf32> to vector<32x128xf32>
    %97 = arith.mulf %93, %96 : vector<32x128xf32>
    %c1_i32_55 = arith.constant 1 : i32
    %98 = tpu.dynamic_rotate %82 by %c1_i32_55 dim 1 : vector<32x128xf32>, i32 -> vector<32x128xf32>
    %c12 = arith.constant 12 : index
    %c0_56 = arith.constant 0 : index
    %c0_57 = arith.constant 0 : index
    %99 = vector.load %arg5[%c12, %c0_56, %c0_57] : memref<18x1x128xf32, #tpu.memory_space<vmem>>, vector<1x1x128xf32>
    %100 = vector.shape_cast %99 : vector<1x1x128xf32> to vector<1x128xf32>
    %101 = vector.broadcast %100 : vector<1x128xf32> to vector<32x128xf32>
    %102 = arith.mulf %98, %101 : vector<32x128xf32>
    %c13 = arith.constant 13 : index
    %c0_58 = arith.constant 0 : index
    %c0_59 = arith.constant 0 : index
    %103 = vector.load %arg5[%c13, %c0_58, %c0_59] : memref<18x1x128xf32, #tpu.memory_space<vmem>>, vector<1x1x128xf32>
    %104 = vector.shape_cast %103 : vector<1x1x128xf32> to vector<1x128xf32>
    %105 = vector.broadcast %104 : vector<1x128xf32> to vector<32x128xf32>
    %106 = arith.mulf %82, %105 : vector<32x128xf32>
    %c127_i32_60 = arith.constant 127 : i32
    %107 = tpu.dynamic_rotate %82 by %c127_i32_60 dim 1 : vector<32x128xf32>, i32 -> vector<32x128xf32>
    %c14 = arith.constant 14 : index
    %c0_61 = arith.constant 0 : index
    %c0_62 = arith.constant 0 : index
    %108 = vector.load %arg5[%c14, %c0_61, %c0_62] : memref<18x1x128xf32, #tpu.memory_space<vmem>>, vector<1x1x128xf32>
    %109 = vector.shape_cast %108 : vector<1x1x128xf32> to vector<1x128xf32>
    %110 = vector.broadcast %109 : vector<1x128xf32> to vector<32x128xf32>
    %111 = arith.mulf %107, %110 : vector<32x128xf32>
    %c125_i32 = arith.constant 125 : i32
    %112 = tpu.dynamic_rotate %82 by %c125_i32 dim 1 : vector<32x128xf32>, i32 -> vector<32x128xf32>
    %c15 = arith.constant 15 : index
    %c0_63 = arith.constant 0 : index
    %c0_64 = arith.constant 0 : index
    %113 = vector.load %arg5[%c15, %c0_63, %c0_64] : memref<18x1x128xf32, #tpu.memory_space<vmem>>, vector<1x1x128xf32>
    %114 = vector.shape_cast %113 : vector<1x1x128xf32> to vector<1x128xf32>
    %115 = vector.broadcast %114 : vector<1x128xf32> to vector<32x128xf32>
    %116 = arith.mulf %112, %115 : vector<32x128xf32>
    %c124_i32 = arith.constant 124 : i32
    %117 = tpu.dynamic_rotate %82 by %c124_i32 dim 1 : vector<32x128xf32>, i32 -> vector<32x128xf32>
    %c16_65 = arith.constant 16 : index
    %c0_66 = arith.constant 0 : index
    %c0_67 = arith.constant 0 : index
    %118 = vector.load %arg5[%c16_65, %c0_66, %c0_67] : memref<18x1x128xf32, #tpu.memory_space<vmem>>, vector<1x1x128xf32>
    %119 = vector.shape_cast %118 : vector<1x1x128xf32> to vector<1x128xf32>
    %120 = vector.broadcast %119 : vector<1x128xf32> to vector<32x128xf32>
    %121 = arith.mulf %117, %120 : vector<32x128xf32>
    %c123_i32 = arith.constant 123 : i32
    %122 = tpu.dynamic_rotate %82 by %c123_i32 dim 1 : vector<32x128xf32>, i32 -> vector<32x128xf32>
    %c17 = arith.constant 17 : index
    %c0_68 = arith.constant 0 : index
    %c0_69 = arith.constant 0 : index
    %123 = vector.load %arg5[%c17, %c0_68, %c0_69] : memref<18x1x128xf32, #tpu.memory_space<vmem>>, vector<1x1x128xf32>
    %124 = vector.shape_cast %123 : vector<1x1x128xf32> to vector<1x128xf32>
    %125 = vector.broadcast %124 : vector<1x128xf32> to vector<32x128xf32>
    %126 = arith.mulf %122, %125 : vector<32x128xf32>
    %127 = tpu.concatenate %87, %92, %97, %102, %106, %111, %116, %121, %126 in 0 : vector<32x128xf32>, vector<32x128xf32>, vector<32x128xf32>, vector<32x128xf32>, vector<32x128xf32>, vector<32x128xf32>, vector<32x128xf32>, vector<32x128xf32>, vector<32x128xf32> -> vector<288x128xf32>
    %128 = arith.truncf %127 : vector<288x128xf32> to vector<288x128xbf16>
    %c0_70 = arith.constant 0 : index
    %c0_71 = arith.constant 0 : index
    %129 = vector.load %arg3[%c0_70, %c0_71] : memref<64x288xbf16, #tpu.memory_space<vmem>>, vector<64x288xbf16>
    %cst_72 = arith.constant dense<0.000000e+00> : vector<64x128xf32>
    %130 = tpu.matmul %129, %128, %cst_72 {dimension_numbers = #tpu.dot_dimension_numbers<[1], [0], [0], [1], [0, 0, 1, 1], [], []>} : vector<64x288xbf16>, vector<288x128xbf16>, vector<64x128xf32> -> vector<64x128xf32>
    %c48 = arith.constant 48 : index
    %c0_73 = arith.constant 0 : index
    %131 = vector.load %arg9[%c48, %c0_73] : memref<336x1xf32, #tpu.memory_space<vmem>>, vector<64x1xf32>
    %132 = vector.broadcast %131 : vector<64x1xf32> to vector<64x128xf32>
    %133 = arith.addf %130, %132 : vector<64x128xf32>
    %cst_74 = arith.constant 0.000000e+00 : f32
    %134 = vector.broadcast %cst_74 : f32 to vector<64x128xf32>
    %135 = arith.maximumf %133, %134 : vector<64x128xf32>
    %c127_i32_75 = arith.constant 127 : i32
    %136 = tpu.dynamic_rotate %135 by %c127_i32_75 dim 1 : vector<64x128xf32>, i32 -> vector<64x128xf32>
    %c124_i32_76 = arith.constant 124 : i32
    %137 = tpu.dynamic_rotate %135 by %c124_i32_76 dim 1 : vector<64x128xf32>, i32 -> vector<64x128xf32>
    %c123_i32_77 = arith.constant 123 : i32
    %138 = tpu.dynamic_rotate %135 by %c123_i32_77 dim 1 : vector<64x128xf32>, i32 -> vector<64x128xf32>
    %139 = arith.maximumf %135, %136 : vector<64x128xf32>
    %140 = arith.maximumf %137, %138 : vector<64x128xf32>
    %141 = arith.maximumf %139, %140 : vector<64x128xf32>
    %142 = arith.truncf %141 : vector<64x128xf32> to vector<64x128xbf16>
    %c0_78 = arith.constant 0 : index
    %c0_79 = arith.constant 0 : index
    %143 = vector.load %arg7[%c0_78, %c0_79] : memref<128x128xbf16, #tpu.memory_space<vmem>>, vector<128x128xbf16>
    %cst_80 = arith.constant dense<0.000000e+00> : vector<64x128xf32>
    %144 = tpu.matmul %142, %143, %cst_80 {dimension_numbers = #tpu.dot_dimension_numbers<[1], [0], [0], [1], [0, 0, 1, 1], [], []>} : vector<64x128xbf16>, vector<128x128xbf16>, vector<64x128xf32> -> vector<64x128xf32>
    %145 = arith.truncf %144 : vector<64x128xf32> to vector<64x128xbf16>
    %c0_81 = arith.constant 0 : index
    %c0_82 = arith.constant 0 : index
    %c0_83 = arith.constant 0 : index
    %146 = vector.load %arg8[%c0_81, %c0_82, %c0_83] : memref<4x128x2xbf16, #tpu.memory_space<vmem>>, vector<1x128x2xbf16>
    %147 = vector.shape_cast %146 : vector<1x128x2xbf16> to vector<128x2xbf16>
    %cst_84 = arith.constant dense<0.000000e+00> : vector<64x2xf32>
    %148 = tpu.matmul %145, %147, %cst_84 {dimension_numbers = #tpu.dot_dimension_numbers<[1], [0], [0], [1], [0, 0, 1, 1], [], []>} : vector<64x128xbf16>, vector<128x2xbf16>, vector<64x2xf32> -> vector<64x2xf32>
    %c1_85 = arith.constant 1 : index
    %c0_86 = arith.constant 0 : index
    %c0_87 = arith.constant 0 : index
    %149 = vector.load %arg8[%c1_85, %c0_86, %c0_87] : memref<4x128x2xbf16, #tpu.memory_space<vmem>>, vector<1x128x2xbf16>
    %150 = vector.shape_cast %149 : vector<1x128x2xbf16> to vector<128x2xbf16>
    %cst_88 = arith.constant dense<0.000000e+00> : vector<64x2xf32>
    %151 = tpu.matmul %145, %150, %cst_88 {dimension_numbers = #tpu.dot_dimension_numbers<[1], [0], [0], [1], [0, 0, 1, 1], [], []>} : vector<64x128xbf16>, vector<128x2xbf16>, vector<64x2xf32> -> vector<64x2xf32>
    %c2_89 = arith.constant 2 : index
    %c0_90 = arith.constant 0 : index
    %c0_91 = arith.constant 0 : index
    %152 = vector.load %arg8[%c2_89, %c0_90, %c0_91] : memref<4x128x2xbf16, #tpu.memory_space<vmem>>, vector<1x128x2xbf16>
    %153 = vector.shape_cast %152 : vector<1x128x2xbf16> to vector<128x2xbf16>
    %cst_92 = arith.constant dense<0.000000e+00> : vector<64x2xf32>
    %154 = tpu.matmul %145, %153, %cst_92 {dimension_numbers = #tpu.dot_dimension_numbers<[1], [0], [0], [1], [0, 0, 1, 1], [], []>} : vector<64x128xbf16>, vector<128x2xbf16>, vector<64x2xf32> -> vector<64x2xf32>
    %c3_93 = arith.constant 3 : index
    %c0_94 = arith.constant 0 : index
    %c0_95 = arith.constant 0 : index
    %155 = vector.load %arg8[%c3_93, %c0_94, %c0_95] : memref<4x128x2xbf16, #tpu.memory_space<vmem>>, vector<1x128x2xbf16>
    %156 = vector.shape_cast %155 : vector<1x128x2xbf16> to vector<128x2xbf16>
    %cst_96 = arith.constant dense<0.000000e+00> : vector<64x2xf32>
    %157 = tpu.matmul %145, %156, %cst_96 {dimension_numbers = #tpu.dot_dimension_numbers<[1], [0], [0], [1], [0, 0, 1, 1], [], []>} : vector<64x128xbf16>, vector<128x2xbf16>, vector<64x2xf32> -> vector<64x2xf32>
    %158 = tpu.concatenate %148, %151, %154, %157 in 0 : vector<64x2xf32>, vector<64x2xf32>, vector<64x2xf32>, vector<64x2xf32> -> vector<256x2xf32>
    %159 = arith.truncf %158 : vector<256x2xf32> to vector<256x2xbf16>
    %c0_97 = arith.constant 0 : index
    %c0_98 = arith.constant 0 : index
    %160 = vector.load %arg4[%c0_97, %c0_98] : memref<32x256xbf16, #tpu.memory_space<vmem>>, vector<32x256xbf16>
    %cst_99 = arith.constant dense<0.000000e+00> : vector<32x2xf32>
    %161 = tpu.matmul %160, %159, %cst_99 {dimension_numbers = #tpu.dot_dimension_numbers<[1], [0], [0], [1], [0, 0, 1, 1], [], []>} : vector<32x256xbf16>, vector<256x2xbf16>, vector<32x2xf32> -> vector<32x2xf32>
    %c112 = arith.constant 112 : index
    %c0_100 = arith.constant 0 : index
    %162 = vector.load %arg9[%c112, %c0_100] : memref<336x1xf32, #tpu.memory_space<vmem>>, vector<32x1xf32>
    %163 = vector.broadcast %162 : vector<32x1xf32> to vector<32x2xf32>
    %164 = arith.addf %161, %163 : vector<32x2xf32>
    %cst_101 = arith.constant 0.000000e+00 : f32
    %165 = vector.broadcast %cst_101 : f32 to vector<32x2xf32>
    %166 = arith.maximumf %164, %165 : vector<32x2xf32>
    %c0_102 = arith.constant 0 : index
    %c0_103 = arith.constant 0 : index
    %167 = vector.load %arg10[%c0_102, %c0_103] : memref<192x32xf32, #tpu.memory_space<vmem>>, vector<32x32xf32>
    %c0_104 = arith.constant 0 : index
    %c0_105 = arith.constant 0 : index
    %168 = vector.load %arg11[%c0_104, %c0_105] : memref<32x2xf32, #tpu.memory_space<vmem>>, vector<32x2xf32>
    %cst_106 = arith.constant dense<0.000000e+00> : vector<32x2xf32>
    %169 = tpu.matmul %167, %168, %cst_106 {dimension_numbers = #tpu.dot_dimension_numbers<[1], [0], [0], [1], [0, 0, 1, 1], [], []>} : vector<32x32xf32>, vector<32x2xf32>, vector<32x2xf32> -> vector<32x2xf32>
    %c144 = arith.constant 144 : index
    %c0_107 = arith.constant 0 : index
    %170 = vector.load %arg9[%c144, %c0_107] : memref<336x1xf32, #tpu.memory_space<vmem>>, vector<32x1xf32>
    %171 = vector.broadcast %170 : vector<32x1xf32> to vector<32x2xf32>
    %172 = arith.addf %169, %171 : vector<32x2xf32>
    %cst_108 = arith.constant 0.000000e+00 : f32
    %173 = vector.broadcast %cst_108 : f32 to vector<32x2xf32>
    %174 = arith.maximumf %172, %173 : vector<32x2xf32>
    %c32 = arith.constant 32 : index
    %c0_109 = arith.constant 0 : index
    %175 = vector.load %arg10[%c32, %c0_109] : memref<192x32xf32, #tpu.memory_space<vmem>>, vector<32x32xf32>
    %cst_110 = arith.constant dense<0.000000e+00> : vector<32x2xf32>
    %176 = tpu.matmul %175, %174, %cst_110 {dimension_numbers = #tpu.dot_dimension_numbers<[1], [0], [0], [1], [0, 0, 1, 1], [], []>} : vector<32x32xf32>, vector<32x2xf32>, vector<32x2xf32> -> vector<32x2xf32>
    %c176 = arith.constant 176 : index
    %c0_111 = arith.constant 0 : index
    %177 = vector.load %arg9[%c176, %c0_111] : memref<336x1xf32, #tpu.memory_space<vmem>>, vector<32x1xf32>
    %178 = vector.broadcast %177 : vector<32x1xf32> to vector<32x2xf32>
    %179 = arith.addf %176, %178 : vector<32x2xf32>
    %cst_112 = arith.constant 0.000000e+00 : f32
    %180 = vector.broadcast %cst_112 : f32 to vector<32x2xf32>
    %181 = arith.maximumf %179, %180 : vector<32x2xf32>
    %c64 = arith.constant 64 : index
    %c0_113 = arith.constant 0 : index
    %182 = vector.load %arg10[%c64, %c0_113] : memref<192x32xf32, #tpu.memory_space<vmem>>, vector<32x32xf32>
    %cst_114 = arith.constant dense<0.000000e+00> : vector<32x2xf32>
    %183 = tpu.matmul %182, %181, %cst_114 {dimension_numbers = #tpu.dot_dimension_numbers<[1], [0], [0], [1], [0, 0, 1, 1], [], []>} : vector<32x32xf32>, vector<32x2xf32>, vector<32x2xf32> -> vector<32x2xf32>
    %c208 = arith.constant 208 : index
    %c0_115 = arith.constant 0 : index
    %184 = vector.load %arg9[%c208, %c0_115] : memref<336x1xf32, #tpu.memory_space<vmem>>, vector<32x1xf32>
    %185 = vector.broadcast %184 : vector<32x1xf32> to vector<32x2xf32>
    %186 = arith.addf %183, %185 : vector<32x2xf32>
    %c96 = arith.constant 96 : index
    %c0_116 = arith.constant 0 : index
    %187 = vector.load %arg10[%c96, %c0_116] : memref<192x32xf32, #tpu.memory_space<vmem>>, vector<32x32xf32>
    %c0_117 = arith.constant 0 : index
    %c0_118 = arith.constant 0 : index
    %188 = vector.load %arg12[%c0_117, %c0_118] : memref<32x8xf32, #tpu.memory_space<vmem>>, vector<32x8xf32>
    %cst_119 = arith.constant dense<0.000000e+00> : vector<32x8xf32>
    %189 = tpu.matmul %187, %188, %cst_119 {dimension_numbers = #tpu.dot_dimension_numbers<[1], [0], [0], [1], [0, 0, 1, 1], [], []>} : vector<32x32xf32>, vector<32x8xf32>, vector<32x8xf32> -> vector<32x8xf32>
    %c240 = arith.constant 240 : index
    %c0_120 = arith.constant 0 : index
    %190 = vector.load %arg9[%c240, %c0_120] : memref<336x1xf32, #tpu.memory_space<vmem>>, vector<32x1xf32>
    %191 = vector.broadcast %190 : vector<32x1xf32> to vector<32x8xf32>
    %192 = arith.addf %189, %191 : vector<32x8xf32>
    %193 = math.tanh %192 : vector<32x8xf32>
    %c128 = arith.constant 128 : index
    %c0_121 = arith.constant 0 : index
    %194 = vector.load %arg10[%c128, %c0_121] : memref<192x32xf32, #tpu.memory_space<vmem>>, vector<32x32xf32>
    %cst_122 = arith.constant dense<0.000000e+00> : vector<32x8xf32>
    %195 = tpu.matmul %194, %193, %cst_122 {dimension_numbers = #tpu.dot_dimension_numbers<[1], [0], [0], [1], [0, 0, 1, 1], [], []>} : vector<32x32xf32>, vector<32x8xf32>, vector<32x8xf32> -> vector<32x8xf32>
    %c272 = arith.constant 272 : index
    %c0_123 = arith.constant 0 : index
    %196 = vector.load %arg9[%c272, %c0_123] : memref<336x1xf32, #tpu.memory_space<vmem>>, vector<32x1xf32>
    %197 = vector.broadcast %196 : vector<32x1xf32> to vector<32x8xf32>
    %198 = arith.addf %195, %197 : vector<32x8xf32>
    %199 = math.tanh %198 : vector<32x8xf32>
    %c160 = arith.constant 160 : index
    %c0_124 = arith.constant 0 : index
    %200 = vector.load %arg10[%c160, %c0_124] : memref<192x32xf32, #tpu.memory_space<vmem>>, vector<32x32xf32>
    %cst_125 = arith.constant dense<0.000000e+00> : vector<32x8xf32>
    %201 = tpu.matmul %200, %199, %cst_125 {dimension_numbers = #tpu.dot_dimension_numbers<[1], [0], [0], [1], [0, 0, 1, 1], [], []>} : vector<32x32xf32>, vector<32x8xf32>, vector<32x8xf32> -> vector<32x8xf32>
    %c304 = arith.constant 304 : index
    %c0_126 = arith.constant 0 : index
    %202 = vector.load %arg9[%c304, %c0_126] : memref<336x1xf32, #tpu.memory_space<vmem>>, vector<32x1xf32>
    %203 = vector.broadcast %202 : vector<32x1xf32> to vector<32x8xf32>
    %204 = arith.addf %201, %203 : vector<32x8xf32>
    %205 = arith.mulf %166, %186 : vector<32x2xf32>
    %cst_127 = arith.constant dense<0.000000e+00> : vector<2x8xf32>
    %206 = tpu.matmul %205, %204, %cst_127 {dimension_numbers = #tpu.dot_dimension_numbers<[0], [0], [1], [1], [0, 1, 1, 1], [], []>} : vector<32x2xf32>, vector<32x8xf32>, vector<2x8xf32> -> vector<2x8xf32>
    %c0_128 = arith.constant 0 : index
    %c0_129 = arith.constant 0 : index
    %207 = vector.load %arg13[%c0_128, %c0_129] : memref<2x8xf32, #tpu.memory_space<vmem>>, vector<2x8xf32>
    tpu.vector_store %arg13[%c0_128, %c0_129], %206 {strides = array<i32>} : memref<2x8xf32, #tpu.memory_space<vmem>>, vector<2x8xf32>,
    return
  }
}

</mosaic_0001>

<bundles_post_ra>
// kernel: opnn_forward.1
= control target key start
LH: loop header
LB: loop body
LE: loop exit
PB: predicated region body
PF: predicated region fallthrough
CT: control target
= control target key end

     0   :  { %vm64_vm0 = vcmask 1043456   ;;  %vm65_vm1 = vcmask 1044480   ;;  %v2715_v5 = vmov 65535   ;;  %vm60_vm2 = vcmask 72704   ;;  %s3611_s0 = inlined_call_operand.vmem [shape: bf16[4,9,128], index: 0, kind: input, shape index: {}]   ;;  %s3612_s1 = inlined_call_operand.vmem [shape: bf16[16,9], index: 1, kind: input, shape index: {}]   ;;  %s3613_s2 = inlined_call_operand.vmem [shape: bf16[32,144], index: 2, kind: input, shape index: {}]   ;;  %s3614_s3 = inlined_call_operand.vmem [shape: bf16[64,288], index: 3, kind: input, shape index: {}]   ;;  %s3615_s4 = inlined_call_operand.vmem [shape: bf16[32,256], index: 4, kind: input, shape index: {}]   ;;  %s3616_s5 = inlined_call_operand.vmem [shape: f32[18,1,128], index: 5, kind: input, shape index: {}]   ;;  %s3617_s6 = inlined_call_operand.vmem [shape: bf16[128,128], index: 6, kind: input, shape index: {}]   ;;  %s3618_s7 = inlined_call_operand.vmem [shape: bf16[128,128], index: 7, kind: input, shape index: {}]   ;;  %s3619_s8 = inlined_call_operand.vmem [shape: bf16[4,128,2], index: 8, kind: input, shape index: {}]   ;;  %s3620_s9 = inlined_call_operand.vmem [shape: f32[336,1], index: 9, kind: input, shape index: {}]   ;;  %s3621_s10 = inlined_call_operand.vmem [shape: f32[192,32], index: 10, kind: input, shape index: {}]   ;;  %s3622_s11 = inlined_call_operand.vmem [shape: f32[32,2], index: 11, kind: input, shape index: {}]   ;;  %s3623_s12 = inlined_call_operand.vmem [shape: f32[32,8], index: 12, kind: input, shape index: {}]   ;;  %s3624_s13 = inlined_call_operand.hbm [shape: f32[2,8], index: 13, kind: output, shape index: {}]  }
   0x1   :  { %v2071_v0 = vld [vmem:[%s3611_s0] sm:$0xf]  ;;  %v2464_v1 = vld [vmem:[%s3611_s0] sm:$0x10]  ;;  %v2078_v3 = vld [vmem:[%s3611_s0 + $0x8] sm:$0xf] }
   0x2   :  { %v2072_v2 = vor.u32 %v2464_v1, %v2071_v0  ;;  %v2465_v4 = vld [vmem:[%s3611_s0 + $0x8] sm:$0x10]  ;;  %v66_v6 = vsel %vm64_vm0, 4294967295, %v2715_v5  ;;  %v2085_v8 = vld [vmem:[%s3611_s0 + $0x10] sm:$0xf]  ;;  %v2463_v17 = vld [vmem:[%s3612_s1] sm:$0xff] }
   0x3   :  { %v2079_v7 = vor.u32 %v2465_v4, %v2078_v3  ;;  %v2466_v9 = vld [vmem:[%s3611_s0 + $0x10] sm:$0x10]  ;;  %v67_v10 = vsel %vm65_vm1, %v66_v6, 0  ;;  %v2092_v12 = vld [vmem:[%s3611_s0 + $0x18] sm:$0xf]  ;;  %v2716_v18 = vmov 0  }
   0x4   :  { %v2086_v11 = vor.u32 %v2466_v9, %v2085_v8  ;;  %v2467_v13 = vld [vmem:[%s3611_s0 + $0x18] sm:$0x10]  ;;  %v69_v14 = vand.u32 %v2072_v2, %v67_v10  ;;  %2562 = vset.pattern.permute.xlu0 %v2716_v18  ;;  %v166_v19 = vld [vmem:[%s3620_s9] sm:$0xff]  ;;  %2563 = vset.pattern.permute.xlu1 %v2716_v18  ;;  %v167_v22 = vld [vmem:[%s3620_s9 + $0x8] sm:$0xff] }
   0x5   :  { %v94_v15 = vand.u32 %v2079_v7, %v67_v10  ;;  %v2093_v16 = vor.u32 %v2467_v13, %v2092_v12  ;;  %170 = vperm.xlu0 %2562, %v166_v19   ;;  %2564 = vset.pattern.permute.xlu2 %v2716_v18 }
   0x6   :  { %v119_v20 = vand.u32 %v2086_v11, %v67_v10  ;;  %78 = vmatpush.bf16.msra.mxu0 %v69_v14 }
   0x7   :  { %103 = vmatpush.bf16.msra.mxu1 %v94_v15  ;;  %v144_v21 = vand.u32 %v2093_v16, %v67_v10 }
   0x8   :  { %128 = vmatpush.bf16.msra.mxu2 %v119_v20 }
   0x9   :  { %153 = vmatpush.bf16.msra.mxu3 %v144_v21  ;;  %2073 = vmatmul.msk.bf16.vlgmr.msra.gmra.mxu0 %vm60_vm2, %v2463_v17 }
   0xa   :  { %2080 = vmatmul.msk.bf16.vlgmr.msra.gmra.mxu1 %vm60_vm2, %v2463_v17 }
   0xb   :  { %2087 = vmatmul.msk.bf16.vlgmr.msra.gmra.mxu2 %vm60_vm2, %v2463_v17 }
   0xc   :  { %18 = vsyncpa [#allocation3], 0  ;;  %2094 = vmatmul.msk.bf16.vlgmr.msra.gmra.mxu3 %vm60_vm2, %v2463_v17  ;;  %s2717_s1 = smov 127   ;;  %s2718_s29 = smov 121   ;;  %v2663_v42 = vld [vmem:[%s3616_s5 + $0x4] ss:$0 sm:$0xff] }
   0xd   :  { %175 = vperm.xlu0 %2562, %v167_v22   ;;  %s2719_s30 = smov 120   ;;  %s2720_s16 = smov 1   ;;  %v289_v47 = vld [vmem:[%s3620_s9 + $0x10] sm:$0xff]  ;;  %v292_v48 = vld [vmem:[%s3620_s9 + $0x28] sm:$0xff]  ;;  %v2658_v53 = vld [vmem:[%s3616_s5 + $0x7] ss:$0 sm:$0xff] }
   0xe   :  { %s2721_s17 = smov 8   ;;  %s2722_s18 = smov 9   ;;  %v2655_v56 = vld [vmem:[%s3616_s5 + $0x6] ss:$0 sm:$0xff]  ;;  %v2657_v63 = vld [vmem:[%s3616_s5 + $0x5] ss:$0 sm:$0xff] }
   0xf   :  { %s2723_s19 = smov 7   ;;  %s2724_s24 = smov 119   ;;  %v2656_v6 = vld [vmem:[%s3616_s5 + $0x3] ss:$0 sm:$0xff]  ;;  %v2659_v11 = vld [vmem:[%s3616_s5 + $0x2] ss:$0 sm:$0xff] }
  0x10   :  { %v290_v15 = vld [vmem:[%s3620_s9 + $0x18] sm:$0xff]  ;;  %v2661_v17 = vld [vmem:[%s3616_s5 + $0x1] ss:$0 sm:$0xff]  ;;  %v2660_v22 = vld [vmem:[%s3616_s5] ss:$0 sm:$0xff]  ;;  %vm331_vm3 = vcmask 130048  }
  0x11   :  { %v291_v21 = vld [vmem:[%s3620_s9 + $0x20] sm:$0xff]  ;;  %s2726_s28 = smov 124   ;;  %s2729_s14 = smov 5   ;;  %vm788_vm4 = vcmask 261120   ;;  %vm2047_vm5 = vcmask 58368  }
  0x77   :  { %v171_v29 = vpop.permute.xlu0 %170 }
  0x7f   :  { %v176_v40 = vpop.permute.xlu0 %175 }
  0x86   :  { %v80_v23 = vpop.f32.mrf.mxu0 }
  0x87   :  { %v105_v24 = vpop.f32.mrf.mxu1 }
  0x88   :  { %v160_v25 = vmax.f32 %v80_v23, %v105_v24 }
  0x8e   :  { %v130_v26 = vpop.f32.mrf.mxu2  ;;  %v82_v32 = vpop.f32.mrf.mxu0 }
  0x8f   :  { %v155_v27 = vpop.f32.mrf.mxu3  ;;  %v107_v33 = vpop.f32.mrf.mxu1 }
  0x90   :  { %v162_v28 = vmax.f32 %v130_v26, %v155_v27  ;;  %v161_v37 = vmax.f32 %v82_v32, %v107_v33 }
  0x92   :  { %v164_v30 = vmax.f32 %v160_v25, %v162_v28  ;;  %v2662_v28 = vld [vmem:[%s3616_s5 + $0x8] ss:$0 sm:$0xff] }
  0x94   :  { %v178_v31 = vadd.f32 %v171_v29, %v164_v30  ;;  %v2105_v29 = vld [vmem:[%s3613_s2] sm:$0xf]  ;;  %v2469_v30 = vld [vmem:[%s3613_s2 + $0x4] sm:$0xf0] }
  0x96   :  { %v180_v34 = vmax.f32 %v178_v31, 0.0  ;;  %v132_v35 = vpop.f32.mrf.mxu2 }
  0x97   :  { %v157_v36 = vpop.f32.mrf.mxu3 }
  0x98   :  { %v163_v38 = vmax.f32 %v132_v35, %v157_v36  ;;  %232 = vrot.lane.b32.xlu0 %v180_v34, %s2717_s1  ;;  %243 = vrot.lane.b32.xlu2 %v180_v34, %s2718_s29  ;;  %v230_v44 = vmul.f32 %v2663_v42, %v180_v34 }
  0x99   :  { %254 = vrot.lane.b32.xlu1 %v180_v34, %s2719_s30 }
  0x9a   :  { %v165_v39 = vmax.f32 %v161_v37, %v163_v38  ;;  %v2468_v37 = vld [vmem:[%s3613_s2 + $0x4] sm:$0xf]  ;;  %v2107_v38 = vld [vmem:[%s3613_s2 + $0x8] sm:$0xf0] }
  0x9c   :  { %v179_v41 = vadd.f32 %v176_v40, %v165_v39  ;;  %v2110_v40 = vor.u32 %v2468_v37, %v2107_v38 }
  0x9e   :  { %v181_v43 = vmax.f32 %v179_v41, 0.0  ;;  %v2113_v41 = vld [vmem:[%s3613_s2 + $0x10] sm:$0xf] }
  0xa0   :  { %216 = vrot.lane.b32.xlu0 %v181_v43, %s2720_s16  ;;  %245 = vrot.lane.b32.xlu2 %v181_v43, %s2718_s29  ;;  %v231_v45 = vmul.f32 %v2663_v42, %v181_v43  ;;  %v2471_v42 = vld [vmem:[%s3613_s2 + $0x14] sm:$0xf0]  ;;  %s2727_s29 = smov 4  }
  0xa1   :  { %256 = vrot.lane.b32.xlu1 %v181_v43, %s2719_s30 }
  0xa2   :  { %v280_v46 = vpack.c.bf16 %v231_v45, %v230_v44  ;;  %v2470_v44 = vld [vmem:[%s3613_s2 + $0x14] sm:$0xf]  ;;  %v2115_v45 = vld [vmem:[%s3613_s2 + $0x18] sm:$0xf0]  ;;  %s2728_s2 = smov 3  }
  0xa8   :  { %192 = vrot.lane.b32.xlu0 %v180_v34, %s2721_s17  ;;  %214 = vrot.lane.b32.xlu2 %v180_v34, %s2720_s16 }
  0xa9   :  { %234 = vrot.lane.b32.xlu1 %v181_v43, %s2717_s1 }
  0xb0   :  { %184 = vrot.lane.b32.xlu0 %v181_v43, %s2722_s18  ;;  %205 = vrot.lane.b32.xlu2 %v181_v43, %s2723_s19 }
  0xb1   :  { %203 = vrot.lane.b32.xlu1 %v180_v34, %s2723_s19 }
  0xb8   :  { %295 = vperm.xlu0 %2562, %v289_v47   ;;  %182 = vrot.lane.b32.xlu2 %v180_v34, %s2722_s18 }
  0xb9   :  { %194 = vrot.lane.b32.xlu1 %v181_v43, %s2721_s17 }
  0xc0   :  { %310 = vperm.xlu0 %2562, %v292_v48   ;;  %267 = vrot.lane.b32.xlu2 %v181_v43, %s2724_s24  ;;  %v2114_v43 = vor.u32 %v2471_v42, %v2113_v41 }
  0xc1   :  { %265 = vrot.lane.b32.xlu1 %v180_v34, %s2724_s24  ;;  %v2106_v34 = vor.u32 %v2469_v30, %v2105_v29 }
  0xc8   :  { %305 = vperm.xlu2 %2564, %v291_v21  }
  0xc9   :  { %300 = vperm.xlu1 %2563, %v290_v15   ;;  %v2473_v15 = vld [vmem:[%s3617_s6 + $0x8] sm:$0xff] }
  0xf2   :  { %v244_v49 = vpop.permute.xlu2 %243 }
  0xf3   :  { %v252_v62 = vmul.f32 %v2655_v56, %v244_v49 }
  0xfa   :  { %v246_v50 = vpop.permute.xlu2 %245 }
  0xfb   :  { %v253_v59 = vmul.f32 %v2655_v56, %v246_v50 }
  0xfd   :  { %v282_v0 = vpack.c.bf16 %v253_v59, %v252_v62 }
 0x102   :  { %v215_v54 = vpop.permute.xlu2 %214 }
 0x103   :  { %v223_v10 = vmul.f32 %v2656_v6, %v215_v54 }
 0x10a   :  { %v233_v52 = vpop.permute.xlu0 %232  ;;  %v206_v4 = vpop.permute.xlu2 %205 }
 0x10b   :  { %v255_v51 = vpop.permute.xlu1 %254  ;;  %v241_v2 = vmul.f32 %v2657_v63, %v233_v52  ;;  %v213_v16 = vmul.f32 %v2659_v11, %v206_v4 }
 0x10c   :  { %v263_v57 = vmul.f32 %v2658_v53, %v255_v51 }
 0x112   :  { %v217_v61 = vpop.permute.xlu0 %216  ;;  %v183_v14 = vpop.permute.xlu2 %182 }
 0x113   :  { %v257_v55 = vpop.permute.xlu1 %256  ;;  %v224_v8 = vmul.f32 %v2656_v6, %v217_v61  ;;  %v190_v27 = vmul.f32 %v2660_v22, %v183_v14  ;;  %v2474_v14 = vld [vmem:[%s3617_s6 + $0x10] sm:$0xff] }
 0x114   :  { %v264_v58 = vmul.f32 %v2658_v53, %v257_v55 }
 0x115   :  { %v279_v13 = vpack.c.bf16 %v224_v8, %v223_v10  ;;  %v2478_v10 = vld [vmem:[%s3617_s6 + $0x30] sm:$0xff] }
 0x116   :  { %v283_v60 = vpack.c.bf16 %v264_v58, %v263_v57 }
 0x118   :  { %338 = vmatpush.bf16.msrb.mxu0 %v283_v60 }
 0x11a   :  { %v193_v7 = vpop.permute.xlu0 %192  ;;  %v268_v31 = vpop.permute.xlu2 %267 }
 0x11b   :  { %v235_v1 = vpop.permute.xlu1 %234  ;;  %v201_v23 = vmul.f32 %v2661_v17, %v193_v7  ;;  %v275_v35 = vmul.f32 %v2662_v28, %v268_v31 }
 0x11c   :  { %v242_v3 = vmul.f32 %v2657_v63, %v235_v1  ;;  %339 = vmatpush.bf16.msrb.mxu0 %v282_v0 }
 0x11e   :  { %v281_v5 = vpack.c.bf16 %v242_v3, %v241_v2 }
 0x120   :  { %340 = vmatpush.bf16.msrb.mxu0 %v281_v5 }
 0x122   :  { %v185_v19 = vpop.permute.xlu0 %184  ;;  %v306_v61 = vpop.permute.xlu2 %305 }
 0x123   :  { %v204_v9 = vpop.permute.xlu1 %203  ;;  %v191_v25 = vmul.f32 %v2660_v22, %v185_v19 }
 0x124   :  { %341 = vmatpush.bf16.msrb.mxu0 %v280_v46  ;;  %v212_v12 = vmul.f32 %v2659_v11, %v204_v9  ;;  %v2118_v46 = vor.u32 %v2470_v44, %v2115_v45  ;;  %v2479_v9 = vld [vmem:[%s3617_s6 + $0x38] sm:$0xff]  ;;  %v2477_v11 = vld [vmem:[%s3617_s6 + $0x28] sm:$0xff] }
 0x125   :  { %v276_v32 = vpack.c.bf16 %v191_v25, %v190_v27  ;;  %482 = vmatpush.bf16.msrb.mxu2 %v2479_v9 }
 0x126   :  { %v278_v18 = vpack.c.bf16 %v213_v16, %v212_v12  ;;  %v2476_v12 = vld [vmem:[%s3617_s6 + $0x20] sm:$0xff] }
 0x127   :  { %v2472_v16 = vld [vmem:[%s3617_s6] sm:$0xff] }
 0x128   :  { %342 = vmatpush.bf16.msrb.mxu0 %v279_v13  ;;  %v2475_v13 = vld [vmem:[%s3617_s6 + $0x18] sm:$0xff]  ;;  %s2725_s6 = smov 125  }
 0x129   :  { %483 = vmatpush.bf16.msrb.mxu2 %v2478_v10 }
 0x12a   :  { %v296_v49 = vpop.permute.xlu0 %295 }
 0x12b   :  { %v195_v20 = vpop.permute.xlu1 %194 }
 0x12c   :  { %v202_v24 = vmul.f32 %v2661_v17, %v195_v20  ;;  %343 = vmatpush.bf16.msrb.mxu0 %v278_v18 }
 0x12d   :  { %484 = vmatpush.bf16.msrb.mxu2 %v2477_v11 }
 0x12e   :  { %v277_v26 = vpack.c.bf16 %v202_v24, %v201_v23 }
 0x130   :  { %344 = vmatpush.bf16.msrb.mxu0 %v277_v26 }
 0x131   :  { %485 = vmatpush.bf16.msrb.mxu2 %v2476_v12 }
 0x132   :  { %v311_v2 = vpop.permute.xlu0 %310 }
 0x133   :  { %v266_v33 = vpop.permute.xlu1 %265 }
 0x134   :  { %v274_v36 = vmul.f32 %v2662_v28, %v266_v33  ;;  %345 = vmatpush.bf16.msrb.mxu0 %v276_v32 }
 0x135   :  { %486 = vmatpush.bf16.msrb.mxu2 %v2475_v13 }
 0x136   :  { %v284_v39 = vpack.c.bf16 %v275_v35, %v274_v36 }
 0x137   :  { %346 = vmatmul.bf16.vlgmr.msrb.gmra.mxu0 %v2106_v34 }
 0x138   :  { %364 = vmatpush.bf16.msrb.mxu1 %v284_v39 }
 0x139   :  { %487 = vmatpush.bf16.msrb.mxu2 %v2474_v14 }
 0x13b   :  { %2119 = vmatmul.msk.bf16.vlgmr.msrb.gmra.mxu1 %vm331_vm3, %v2110_v40  ;;  %v301_v50 = vpop.permute.xlu1 %300 }
 0x13d   :  { %488 = vmatpush.bf16.msrb.mxu2 %v2473_v15 }
 0x141   :  { %489 = vmatpush.bf16.msrb.mxu2 %v2472_v16  ;;  %v2664_v16 = vld [vmem:[%s3616_s5 + $0x10] ss:$0 sm:$0xff] }
 0x147   :  { %351 = vmatmul.bf16.gmra.mxu0 %v2114_v43 }
 0x14b   :  { %2120 = vmatmul.msk.bf16.gmra.mxu1 %vm331_vm3, %v2118_v46 }
 0x1b4   :  { %v347_v47 = vpop.f32.mrf.mxu0 }
 0x1b5   :  { %v348_v52 = vadd.f32 %v347_v47, %v296_v49 }
 0x1b8   :  { %v366_v48 = vpop.f32.mrf.mxu1 }
 0x1b9   :  { %v367_v53 = vadd.f32 %v366_v48, %v348_v52 }
 0x1bb   :  { %v376_v57 = vmax.f32 %v367_v53, 0.0  ;;  %v680_v53 = vld [vmem:[%s3620_s9 + $0x30] sm:$0xff] }
 0x1bc   :  { %v349_v51 = vpop.f32.mrf.mxu0 }
 0x1bd   :  { %v350_v54 = vadd.f32 %v349_v51, %v301_v50 }
 0x1c0   :  { %v368_v55 = vpop.f32.mrf.mxu1 }
 0x1c1   :  { %v369_v56 = vadd.f32 %v368_v55, %v350_v54  ;;  %v681_v54 = vld [vmem:[%s3620_s9 + $0x38] sm:$0xff]  ;;  %v682_v55 = vld [vmem:[%s3620_s9 + $0x40] sm:$0xff] }
 0x1c3   :  { %v377_v58 = vmax.f32 %v369_v56, 0.0  ;;  %v683_v56 = vld [vmem:[%s3620_s9 + $0x48] sm:$0xff] }
 0x1c4   :  { %v352_v59 = vpop.f32.mrf.mxu0 }
 0x1c5   :  { %v2575_v60 = vpack.i.bf16 %v377_v58, %v376_v57  ;;  %v353_v63 = vadd.f32 %v352_v59, %v306_v61  ;;  %v685_v59 = vld [vmem:[%s3620_s9 + $0x58] sm:$0xff] }
 0x1c7   :  { %2576 = vrot.lane.b32.xlu0 %v2575_v60, %s2724_s24  ;;  %2571 = vrot.lane.b32.xlu2 %v2575_v60, %s2719_s30 }
 0x1c8   :  { %2566 = vrot.lane.b32.xlu1 %v2575_v60, %s2717_s1  ;;  %v371_v62 = vpop.f32.mrf.mxu1 }
 0x1c9   :  { %v372_v1 = vadd.f32 %v371_v62, %v353_v63 }
 0x1cb   :  { %v378_v5 = vmax.f32 %v372_v1, 0.0 }
 0x1cc   :  { %v354_v0 = vpop.f32.mrf.mxu0 }
 0x1cd   :  { %v355_v3 = vadd.f32 %v354_v0, %v311_v2 }
 0x1d0   :  { %v373_v4 = vpop.f32.mrf.mxu1 }
 0x1d1   :  { %v374_v6 = vadd.f32 %v373_v4, %v355_v3 }
 0x1d3   :  { %v379_v7 = vmax.f32 %v374_v6, 0.0 }
 0x1d5   :  { %v2590_v8 = vpack.i.bf16 %v379_v7, %v378_v5 }
 0x1d7   :  { %2591 = vrot.lane.b32.xlu0 %v2590_v8, %s2724_s24  ;;  %2586 = vrot.lane.b32.xlu2 %v2590_v8, %s2719_s30 }
 0x1d8   :  { %2581 = vrot.lane.b32.xlu1 %v2590_v8, %s2717_s1 }
 0x221   :  { %v2572_v17 = vpop.permute.xlu2 %2571 }
 0x222   :  { %v2574_v19 = vunpack.i.h.bf16 %v2572_v17  ;;  %v2573_v20 = vunpack.i.l.bf16 %v2572_v17 }
 0x231   :  { %v2587_v33 = vpop.permute.xlu2 %2586 }
 0x232   :  { %v2589_v35 = vunpack.i.h.bf16 %v2587_v33  ;;  %v2588_v36 = vunpack.i.l.bf16 %v2587_v33  ;;  %v2665_v33 = vld [vmem:[%s3616_s5 + $0xa] ss:$0 sm:$0xff] }
 0x239   :  { %v2577_v18 = vpop.permute.xlu0 %2576 }
 0x23a   :  { %v2579_v21 = vunpack.i.h.bf16 %v2577_v18  ;;  %v2578_v22 = vunpack.i.l.bf16 %v2577_v18  ;;  %v2567_v23 = vpop.permute.xlu1 %2566 }
 0x23b   :  { %v2569_v24 = vunpack.i.h.bf16 %v2567_v23  ;;  %v2568_v25 = vunpack.i.l.bf16 %v2567_v23 }
 0x23c   :  { %v408_v26 = vmax.f32 %v2573_v20, %v2578_v22  ;;  %v409_v27 = vmax.f32 %v2574_v19, %v2579_v21 }
 0x23d   :  { %v405_v28 = vmax.f32 %v377_v58, %v2569_v24  ;;  %v404_v29 = vmax.f32 %v376_v57, %v2568_v25  ;;  %v684_v58 = vld [vmem:[%s3620_s9 + $0x50] sm:$0xff]  ;;  %v2668_v25 = vld [vmem:[%s3616_s5 + $0xb] ss:$0 sm:$0xff] }
 0x23f   :  { %v413_v30 = vmax.f32 %v405_v28, %v409_v27  ;;  %v412_v31 = vmax.f32 %v404_v29, %v408_v26 }
 0x241   :  { %v416_v32 = vpack.c.bf16 %v413_v30, %v412_v31 }
 0x243   :  { %490 = vmatmul.bf16.vlgmr.msrb.gmra.mxu2 %v416_v32 }
 0x249   :  { %v2592_v34 = vpop.permute.xlu0 %2591 }
 0x24a   :  { %v2594_v37 = vunpack.i.h.bf16 %v2592_v34  ;;  %v2593_v38 = vunpack.i.l.bf16 %v2592_v34  ;;  %v2582_v39 = vpop.permute.xlu1 %2581 }
 0x24b   :  { %v2584_v40 = vunpack.i.h.bf16 %v2582_v39  ;;  %v2583_v41 = vunpack.i.l.bf16 %v2582_v39 }
 0x24c   :  { %v410_v42 = vmax.f32 %v2588_v36, %v2593_v38  ;;  %v411_v43 = vmax.f32 %v2589_v35, %v2594_v37 }
 0x24d   :  { %v407_v44 = vmax.f32 %v379_v7, %v2584_v40  ;;  %v406_v45 = vmax.f32 %v378_v5, %v2583_v41  ;;  %v2667_v7 = vld [vmem:[%s3616_s5 + $0xc] ss:$0 sm:$0xff] }
 0x24f   :  { %v414_v46 = vmax.f32 %v406_v45, %v410_v42  ;;  %v415_v47 = vmax.f32 %v407_v44, %v411_v43  ;;  %v2666_v44 = vld [vmem:[%s3616_s5 + $0xf] ss:$0 sm:$0xff] }
 0x251   :  { %v417_v48 = vpack.c.bf16 %v415_v47, %v414_v46 }
 0x253   :  { %495 = vmatmul.bf16.gmra.mxu2 %v417_v48 }
 0x2c6   :  { %v2940_v49 = vpop.f32.mrf.mxu2 }
 0x2c7   :  { %595 = vrot.lane.b32.xlu1 %v2940_v49, %s2725_s6  ;;  %612 = vrot.lane.b32.xlu2 %v2940_v49, %s2726_s28 }
 0x2c8   :  { %552 = vrot.lane.b32.xlu0 %v2940_v49, %s2720_s16 }
 0x2ce   :  { %v2947_v50 = vpop.f32.mrf.mxu2 }
 0x2cf   :  { %518 = vrot.lane.b32.xlu2 %v2940_v49, %s2727_s29  ;;  %554 = vrot.lane.b32.xlu1 %v2947_v50, %s2720_s16 }
 0x2d0   :  { %535 = vrot.lane.b32.xlu0 %v2940_v49, %s2728_s2 }
 0x2d6   :  { %v2957_v51 = vpop.f32.mrf.mxu2 }
 0x2d7   :  { %597 = vrot.lane.b32.xlu2 %v2947_v50, %s2725_s6  ;;  %537 = vrot.lane.b32.xlu1 %v2947_v50, %s2728_s2 }
 0x2d8   :  { %614 = vrot.lane.b32.xlu0 %v2947_v50, %s2726_s28 }
 0x2de   :  { %v2963_v52 = vpop.f32.mrf.mxu2 }
 0x2df   :  { %539 = vrot.lane.b32.xlu2 %v2957_v51, %s2728_s2  ;;  %556 = vrot.lane.b32.xlu1 %v2957_v51, %s2720_s16 }
 0x2e0   :  { %520 = vrot.lane.b32.xlu0 %v2947_v50, %s2727_s29 }
 0x2e7   :  { %616 = vrot.lane.b32.xlu1 %v2957_v51, %s2726_s28  ;;  %558 = vrot.lane.b32.xlu2 %v2963_v52, %s2720_s16  ;;  %s2730_s16 = smov 123  }
 0x2e8   :  { %599 = vrot.lane.b32.xlu0 %v2957_v51, %s2725_s6 }
 0x2ef   :  { %522 = vrot.lane.b32.xlu1 %v2957_v51, %s2727_s29  ;;  %582 = vrot.lane.b32.xlu2 %v2957_v51, %s2717_s1 }
 0x2f0   :  { %541 = vrot.lane.b32.xlu0 %v2963_v52, %s2728_s2 }
 0x2f7   :  { %501 = vrot.lane.b32.xlu1 %v2940_v49, %s2729_s14  ;;  %618 = vrot.lane.b32.xlu2 %v2963_v52, %s2726_s28 }
 0x2f8   :  { %505 = vrot.lane.b32.xlu0 %v2957_v51, %s2729_s14 }
 0x2ff   :  { %601 = vrot.lane.b32.xlu1 %v2963_v52, %s2725_s6  ;;  %524 = vrot.lane.b32.xlu2 %v2963_v52, %s2727_s29 }
 0x300   :  { %584 = vrot.lane.b32.xlu0 %v2963_v52, %s2717_s1 }
 0x307   :  { %507 = vrot.lane.b32.xlu1 %v2963_v52, %s2729_s14  ;;  %503 = vrot.lane.b32.xlu2 %v2947_v50, %s2729_s14 }
 0x308   :  { %578 = vrot.lane.b32.xlu0 %v2940_v49, %s2717_s1 }
 0x30f   :  { %580 = vrot.lane.b32.xlu1 %v2947_v50, %s2717_s1  ;;  %633 = vrot.lane.b32.xlu2 %v2957_v51, %s2730_s16 }
 0x310   :  { %635 = vrot.lane.b32.xlu0 %v2963_v52, %s2730_s16 }
 0x317   :  { %629 = vrot.lane.b32.xlu1 %v2940_v49, %s2730_s16  ;;  %631 = vrot.lane.b32.xlu2 %v2947_v50, %s2730_s16 }
 0x318   :  { %690 = vperm.xlu0 %2562, %v680_v53  }
 0x31f   :  { %695 = vperm.xlu1 %2563, %v681_v54   ;;  %700 = vperm.xlu2 %2564, %v682_v55  }
 0x320   :  { %705 = vperm.xlu0 %2562, %v683_v56  }
 0x321   :  { %v613_v57 = vpop.permute.xlu2 %612 }
 0x322   :  { %v625_v24 = vmul.f32 %v2664_v16, %v613_v57 }
 0x327   :  { %710 = vperm.xlu1 %2563, %v684_v58   ;;  %715 = vperm.xlu2 %2564, %v685_v59   ;;  %v2669_v58 = vld [vmem:[%s3616_s5 + $0xe] ss:$0 sm:$0xff] }
 0x329   :  { %v519_v60 = vpop.permute.xlu2 %518 }
 0x32a   :  { %v531_v43 = vmul.f32 %v2665_v33, %v519_v60  ;;  %v2670_v60 = vld [vmem:[%s3616_s5 + $0x9] ss:$0 sm:$0xff] }
 0x331   :  { %v3014_v61 = vpop.permute.xlu2 %597 }
 0x332   :  { %v609_v57 = vmul.f32 %v2666_v44, %v3014_v61 }
 0x339   :  { %v596_v62 = vpop.permute.xlu1 %595  ;;  %v540_v63 = vpop.permute.xlu2 %539 }
 0x33a   :  { %v553_v0 = vpop.permute.xlu0 %552  ;;  %v550_v29 = vmul.f32 %v2668_v25, %v540_v63  ;;  %v608_v55 = vmul.f32 %v2666_v44, %v596_v62 }
 0x33b   :  { %v565_v14 = vmul.f32 %v2667_v7, %v553_v0 }
 0x33c   :  { %v658_v59 = vpack.c.bf16 %v609_v57, %v608_v55  ;;  %v2200_v57 = vld [vmem:[%s3614_s3 + $0x48] sm:$0xf] }
 0x341   :  { %v555_v1 = vpop.permute.xlu1 %554  ;;  %v559_v3 = vpop.permute.xlu2 %558 }
 0x342   :  { %v536_v2 = vpop.permute.xlu0 %535  ;;  %v568_v9 = vmul.f32 %v2667_v7, %v559_v3  ;;  %v566_v12 = vmul.f32 %v2667_v7, %v555_v1 }
 0x343   :  { %v548_v34 = vmul.f32 %v2668_v25, %v536_v2 }
 0x344   :  { %v652_v17 = vpack.c.bf16 %v566_v12, %v565_v14 }
 0x349   :  { %v538_v4 = vpop.permute.xlu1 %537  ;;  %v583_v6 = vpop.permute.xlu2 %582 }
 0x34a   :  { %v615_v5 = vpop.permute.xlu0 %614  ;;  %v549_v31 = vmul.f32 %v2668_v25, %v538_v4  ;;  %v593_v1 = vmul.f32 %v2669_v58, %v583_v6  ;;  %v2671_v6 = vld [vmem:[%s3616_s5 + $0x11] ss:$0 sm:$0xff] }
 0x34b   :  { %v626_v22 = vmul.f32 %v2664_v16, %v615_v5 }
 0x34c   :  { %v650_v38 = vpack.c.bf16 %v549_v31, %v548_v34  ;;  %v2166_v31 = vld [vmem:[%s3614_s3 + $0xc] sm:$0xf0] }
 0x34d   :  { %v660_v26 = vpack.c.bf16 %v626_v22, %v625_v24 }
 0x351   :  { %v557_v8 = vpop.permute.xlu1 %556  ;;  %v619_v15 = vpop.permute.xlu2 %618 }
 0x352   :  { %v521_v10 = vpop.permute.xlu0 %520  ;;  %v567_v11 = vmul.f32 %v2667_v7, %v557_v8  ;;  %v628_v19 = vmul.f32 %v2664_v16, %v619_v15 }
 0x353   :  { %v532_v41 = vmul.f32 %v2665_v33, %v521_v10  ;;  %v2481_v10 = vld [vmem:[%s3614_s3 + $0x8] sm:$0xf0] }
 0x354   :  { %v653_v13 = vpack.c.bf16 %v568_v9, %v567_v11  ;;  %v2164_v9 = vld [vmem:[%s3614_s3] sm:$0xf] }
 0x355   :  { %v648_v46 = vpack.c.bf16 %v532_v41, %v531_v43  ;;  %v2485_v41 = vld [vmem:[%s3614_s3 + $0x28] sm:$0xf0] }
 0x356   :  { %801 = vmatpush.bf16.msrb.mxu3 %v653_v13  ;;  %v2165_v13 = vor.u32 %v2481_v10, %v2164_v9 }
 0x359   :  { %v617_v18 = vpop.permute.xlu1 %616  ;;  %v525_v35 = vpop.permute.xlu2 %524 }
 0x35a   :  { %v600_v20 = vpop.permute.xlu0 %599  ;;  %v627_v21 = vmul.f32 %v2664_v16, %v617_v18  ;;  %802 = vmatpush.bf16.msrb.mxu3 %v652_v17  ;;  %v534_v40 = vmul.f32 %v2665_v33, %v525_v35  ;;  %v2672_v17 = vld [vmem:[%s3616_s5 + $0xd] ss:$0 sm:$0xff]  ;;  %s2056_s5 = sshll.u32 %s3624_s13, 4  ;;  %s2057_s5 = int_to_ptr.hbm [resolvable:$true] %s2056_s5 }
 0x35b   :  { %v610_v47 = vmul.f32 %v2666_v44, %v600_v20 }
 0x35c   :  { %v661_v23 = vpack.c.bf16 %v628_v19, %v627_v21  ;;  %v577_v21 = vmul.f32 %v2672_v17, %v2963_v52  ;;  %v574_v52 = vmul.f32 %v2672_v17, %v2940_v49  ;;  %v2176_v49 = vld [vmem:[%s3614_s3 + $0x18] sm:$0xf] }
 0x35e   :  { %830 = vmatpush.bf16.msra.mxu1 %v661_v23  ;;  %v576_v23 = vmul.f32 %v2672_v17, %v2957_v51  ;;  %v2172_v51 = vld [vmem:[%s3614_s3 + $0x8] sm:$0xf] }
 0x361   :  { %v523_v27 = vpop.permute.xlu1 %522  ;;  %v504_v54 = vpop.permute.xlu2 %503 }
 0x362   :  { %v542_v28 = vpop.permute.xlu0 %541  ;;  %831 = vmatpush.bf16.msra.mxu1 %v660_v26  ;;  %v533_v36 = vmul.f32 %v2665_v33, %v523_v27  ;;  %v515_v8 = vmul.f32 %v2670_v60, %v504_v54  ;;  %v575_v26 = vmul.f32 %v2672_v17, %v2947_v50  ;;  %v2482_v50 = vld [vmem:[%s3614_s3 + $0x10] sm:$0xf0]  ;;  %v2488_v54 = vld [vmem:[%s3614_s3 + $0x40] sm:$0xf0] }
 0x363   :  { %v551_v30 = vmul.f32 %v2668_v25, %v542_v28  ;;  %v655_v25 = vpack.c.bf16 %v577_v21, %v576_v23  ;;  %v2480_v28 = vld [vmem:[%s3614_s3 + $0x4] sm:$0xf]  ;;  %v2173_v35 = vor.u32 %v2482_v50, %v2172_v51 }
 0x364   :  { %v649_v42 = vpack.c.bf16 %v534_v40, %v533_v36  ;;  %v654_v33 = vpack.c.bf16 %v575_v26, %v574_v52  ;;  %v2169_v34 = vor.u32 %v2480_v28, %v2166_v31  ;;  %v2484_v36 = vld [vmem:[%s3614_s3 + $0x20] sm:$0xf0]  ;;  %v2184_v40 = vld [vmem:[%s3614_s3 + $0x20] sm:$0xf] }
 0x365   :  { %v651_v32 = vpack.c.bf16 %v551_v30, %v550_v29  ;;  %v2185_v43 = vor.u32 %v2485_v41, %v2184_v40 }
 0x367   :  { %803 = vmatpush.bf16.msrb.mxu3 %v651_v32 }
 0x369   :  { %v502_v37 = vpop.permute.xlu1 %501  ;;  %v634_v7 = vpop.permute.xlu2 %633 }
 0x36a   :  { %v506_v39 = vpop.permute.xlu0 %505  ;;  %v514_v62 = vmul.f32 %v2670_v60, %v502_v37  ;;  %v644_v18 = vmul.f32 %v2671_v6, %v634_v7  ;;  %v2177_v37 = vor.u32 %v2484_v36, %v2176_v49 }
 0x36b   :  { %804 = vmatpush.bf16.msrb.mxu3 %v650_v38  ;;  %v516_v2 = vmul.f32 %v2670_v60, %v506_v39  ;;  %v2483_v38 = vld [vmem:[%s3614_s3 + $0x1c] sm:$0xf]  ;;  %v2178_v39 = vld [vmem:[%s3614_s3 + $0x24] sm:$0xf0] }
 0x36c   :  { %v646_v11 = vpack.c.bf16 %v515_v8, %v514_v62 }
 0x36f   :  { %805 = vmatpush.bf16.msrb.mxu3 %v649_v42  ;;  %v2181_v42 = vor.u32 %v2483_v38, %v2178_v39 }
 0x371   :  { %v602_v45 = vpop.permute.xlu1 %601  ;;  %v632_v24 = vpop.permute.xlu2 %631 }
 0x372   :  { %v611_v48 = vmul.f32 %v2666_v44, %v602_v45  ;;  %v585_v53 = vpop.permute.xlu0 %584  ;;  %v643_v29 = vmul.f32 %v2671_v6, %v632_v24  ;;  %v2188_v44 = vld [vmem:[%s3614_s3 + $0x30] sm:$0xf]  ;;  %v2487_v45 = vld [vmem:[%s3614_s3 + $0x38] sm:$0xf0] }
 0x373   :  { %806 = vmatpush.bf16.msrb.mxu3 %v648_v46  ;;  %v594_v63 = vmul.f32 %v2669_v58, %v585_v53  ;;  %v2189_v46 = vor.u32 %v2487_v45, %v2188_v44  ;;  %v2196_v53 = vld [vmem:[%s3614_s3 + $0x38] sm:$0xf] }
 0x374   :  { %v659_v56 = vpack.c.bf16 %v611_v48, %v610_v47  ;;  %v2486_v47 = vld [vmem:[%s3614_s3 + $0x34] sm:$0xf]  ;;  %v2190_v48 = vld [vmem:[%s3614_s3 + $0x3c] sm:$0xf0] }
 0x375   :  { %v657_v5 = vpack.c.bf16 %v594_v63, %v593_v1  ;;  %v2193_v55 = vor.u32 %v2486_v47, %v2190_v48  ;;  %v2202_v63 = vld [vmem:[%s3614_s3 + $0x54] sm:$0xf0]  ;;  %v2208_v1 = vld [vmem:[%s3614_s3 + $0x50] sm:$0xf] }
 0x376   :  { %832 = vmatpush.bf16.msra.mxu1 %v659_v56  ;;  %v2197_v56 = vor.u32 %v2488_v54, %v2196_v53 }
 0x379   :  { %v508_v0 = vpop.permute.xlu1 %507 }
 0x37a   :  { %v517_v3 = vmul.f32 %v2670_v60, %v508_v0  ;;  %v579_v4 = vpop.permute.xlu0 %578  ;;  %833 = vmatpush.bf16.msra.mxu1 %v658_v59  ;;  %v2489_v60 = vld [vmem:[%s3614_s3 + $0x4c] sm:$0xf] }
 0x37b   :  { %v591_v14 = vmul.f32 %v2669_v58, %v579_v4  ;;  %v2205_v0 = vor.u32 %v2489_v60, %v2202_v63  ;;  %v2494_v60 = vld [vmem:[%s3618_s7 + $0x10] sm:$0xff]  ;;  %v2493_v63 = vld [vmem:[%s3618_s7 + $0x8] sm:$0xff] }
 0x37c   :  { %v647_v61 = vpack.c.bf16 %v517_v3, %v516_v2  ;;  %v2491_v2 = vld [vmem:[%s3614_s3 + $0x58] sm:$0xf0] }
 0x37d   :  { %v2209_v3 = vor.u32 %v2491_v2, %v2208_v1 }
 0x37e   :  { %807 = vmatpush.bf16.msrb.mxu3 %v647_v61  ;;  %834 = vmatpush.bf16.msra.mxu1 %v657_v5 }
 0x381   :  { %v581_v12 = vpop.permute.xlu1 %580 }
 0x382   :  { %v592_v15 = vmul.f32 %v2669_v58, %v581_v12  ;;  %v636_v16 = vpop.permute.xlu0 %635  ;;  %808 = vmatpush.bf16.msrb.mxu3 %v646_v11  ;;  %v2490_v58 = vld [vmem:[%s3614_s3 + $0x50] sm:$0xf0] }
 0x383   :  { %v645_v19 = vmul.f32 %v2671_v6, %v636_v16  ;;  %v2201_v59 = vor.u32 %v2490_v58, %v2200_v57  ;;  %v2497_v57 = vld [vmem:[%s3618_s7 + $0x28] sm:$0xff]  ;;  %v2496_v58 = vld [vmem:[%s3618_s7 + $0x20] sm:$0xff] }
 0x384   :  { %v656_v20 = vpack.c.bf16 %v592_v15, %v591_v14 }
 0x385   :  { %v663_v22 = vpack.c.bf16 %v645_v19, %v644_v18  ;;  %809 = vmatmul.bf16.vlgmr.msrb.gmra.mxu3 %v2165_v13 }
 0x386   :  { %835 = vmatpush.bf16.msra.mxu1 %v656_v20 }
 0x387   :  { %865 = vmatpush.bf16.msra.mxu0 %v663_v22  ;;  %v701_v22 = vpop.permute.xlu2 %700 }
 0x389   :  { %v630_v27 = vpop.permute.xlu1 %629 }
 0x38a   :  { %v642_v30 = vmul.f32 %v2671_v6, %v630_v27  ;;  %836 = vmatpush.bf16.msra.mxu1 %v655_v25  ;;  %v691_v61 = vpop.permute.xlu0 %690  ;;  %v687_v27 = vld [vmem:[%s3620_s9 + $0x68] sm:$0xff] }
 0x38c   :  { %v662_v32 = vpack.c.bf16 %v643_v29, %v642_v30  ;;  %v686_v29 = vld [vmem:[%s3620_s9 + $0x60] sm:$0xff] }
 0x38e   :  { %837 = vmatpush.bf16.msra.mxu1 %v654_v33  ;;  %866 = vmatpush.bf16.msra.mxu0 %v662_v32 }
 0x38f   :  { %v716_v41 = vpop.permute.xlu2 %715 }
 0x391   :  { %838 = vmatmul.bf16.vlgmr.msra.gmra.mxu1 %v2169_v34  ;;  %2210 = vmatmul.msk.bf16.vlgmr.msra.gmra.mxu0 %vm788_vm4, %v2173_v35  ;;  %v696_v10 = vpop.permute.xlu1 %695 }
 0x392   :  { %v706_v26 = vpop.permute.xlu0 %705 }
 0x395   :  { %814 = vmatmul.bf16.gmra.mxu3 %v2177_v37 }
 0x399   :  { %v711_v37 = vpop.permute.xlu1 %710 }
 0x3a1   :  { %843 = vmatmul.bf16.gmra.mxu1 %v2181_v42  ;;  %2211 = vmatmul.msk.bf16.gmra.mxu0 %vm788_vm4, %v2185_v43 }
 0x3a5   :  { %819 = vmatmul.bf16.gmra.mxu3 %v2189_v46 }
 0x3b1   :  { %848 = vmatmul.bf16.gmra.mxu1 %v2193_v55  ;;  %2212 = vmatmul.msk.bf16.gmra.mxu0 %vm788_vm4, %v2197_v56  ;;  %v2499_v55 = vld [vmem:[%s3618_s7 + $0x38] sm:$0xff]  ;;  %v2498_v56 = vld [vmem:[%s3618_s7 + $0x30] sm:$0xff] }
 0x3b2   :  { %1036 = vmatpush.bf16.msra.mxu2 %v2499_v55 }
 0x3b5   :  { %824 = vmatmul.bf16.gmra.mxu3 %v2201_v59  ;;  %v2495_v59 = vld [vmem:[%s3618_s7 + $0x18] sm:$0xff] }
 0x3b6   :  { %1037 = vmatpush.bf16.msra.mxu2 %v2498_v56  ;;  %v1559_v56 = vld [vmem:[%s3620_s9 + $0x98] sm:$0xff] }
 0x3ba   :  { %1038 = vmatpush.bf16.msra.mxu2 %v2497_v57 }
 0x3be   :  { %1039 = vmatpush.bf16.msra.mxu2 %v2496_v58 }
 0x3c1   :  { %853 = vmatmul.bf16.gmra.mxu1 %v2205_v0  ;;  %2213 = vmatmul.msk.bf16.gmra.mxu0 %vm788_vm4, %v2209_v3  ;;  %v2492_v0 = vld [vmem:[%s3618_s7] sm:$0xff] }
 0x3c2   :  { %1040 = vmatpush.bf16.msra.mxu2 %v2495_v59 }
 0x3c6   :  { %1041 = vmatpush.bf16.msra.mxu2 %v2494_v60 }
 0x3ca   :  { %1042 = vmatpush.bf16.msra.mxu2 %v2493_v63 }
 0x3ce   :  { %1043 = vmatpush.bf16.msra.mxu2 %v2492_v0  ;;  %v1779_v0 = vld [vmem:[%s3620_s9 + $0x100] sm:$0xff] }
 0x408   :  { %v810_v4 = vpop.f32.mrf.mxu3 }
 0x409   :  { %v811_v8 = vadd.f32 %v810_v4, %v691_v61 }
 0x40e   :  { %v839_v62 = vpop.f32.mrf.mxu1  ;;  %v868_v5 = vpop.f32.mrf.mxu0 }
 0x40f   :  { %v840_v9 = vadd.f32 %v839_v62, %v811_v8 }
 0x410   :  { %v812_v7 = vpop.f32.mrf.mxu3 }
 0x411   :  { %v813_v6 = vadd.f32 %v812_v7, %v696_v10  ;;  %v3124_v13 = vadd.f32 %v868_v5, %v840_v9 }
 0x413   :  { %v888_v17 = vmax.f32 %v3124_v13, 0.0 }
 0x416   :  { %v841_v11 = vpop.f32.mrf.mxu1  ;;  %v870_v12 = vpop.f32.mrf.mxu0 }
 0x417   :  { %v842_v14 = vadd.f32 %v841_v11, %v813_v6 }
 0x418   :  { %v815_v15 = vpop.f32.mrf.mxu3 }
 0x419   :  { %v3126_v16 = vadd.f32 %v870_v12, %v842_v14  ;;  %v816_v24 = vadd.f32 %v815_v15, %v701_v22 }
 0x41b   :  { %v889_v18 = vmax.f32 %v3126_v16, 0.0 }
 0x41d   :  { %v2605_v19 = vpack.i.bf16 %v889_v18, %v888_v17 }
 0x41e   :  { %v844_v20 = vpop.f32.mrf.mxu1  ;;  %v873_v21 = vpop.f32.mrf.mxu0 }
 0x41f   :  { %2606 = vrot.lane.b32.xlu2 %v2605_v19, %s2730_s16  ;;  %2601 = vrot.lane.b32.xlu1 %v2605_v19, %s2726_s28  ;;  %v845_v25 = vadd.f32 %v844_v20, %v816_v24 }
 0x420   :  { %2596 = vrot.lane.b32.xlu0 %v2605_v19, %s2717_s1  ;;  %v817_v23 = vpop.f32.mrf.mxu3 }
 0x421   :  { %v818_v28 = vadd.f32 %v817_v23, %v706_v26  ;;  %v3143_v31 = vadd.f32 %v873_v21, %v845_v25 }
 0x423   :  { %v890_v33 = vmax.f32 %v3143_v31, 0.0  ;;  %v1560_v31 = vld [vmem:[%s3620_s9 + $0xa0] sm:$0xff] }
 0x426   :  { %v846_v30 = vpop.f32.mrf.mxu1  ;;  %v875_v52 = vpop.f32.mrf.mxu0 }
 0x427   :  { %v847_v51 = vadd.f32 %v846_v30, %v818_v28  ;;  %725 = vperm.xlu1 %2563, %v687_v27  }
 0x428   :  { %720 = vperm.xlu0 %2562, %v686_v29   ;;  %v820_v50 = vpop.f32.mrf.mxu3 }
 0x429   :  { %v3145_v32 = vadd.f32 %v875_v52, %v847_v51  ;;  %v821_v38 = vadd.f32 %v820_v50, %v711_v37 }
 0x42b   :  { %v891_v34 = vmax.f32 %v3145_v32, 0.0  ;;  %v1561_v32 = vld [vmem:[%s3620_s9 + $0xa8] sm:$0xff] }
 0x42d   :  { %v2610_v35 = vpack.i.bf16 %v891_v34, %v890_v33 }
 0x42e   :  { %v849_v49 = vpop.f32.mrf.mxu1  ;;  %v878_v36 = vpop.f32.mrf.mxu0 }
 0x42f   :  { %2611 = vrot.lane.b32.xlu2 %v2610_v35, %s2717_s1  ;;  %2621 = vrot.lane.b32.xlu1 %v2610_v35, %s2730_s16  ;;  %v850_v40 = vadd.f32 %v849_v49, %v821_v38 }
 0x430   :  { %2616 = vrot.lane.b32.xlu0 %v2610_v35, %s2726_s28  ;;  %v822_v39 = vpop.f32.mrf.mxu3 }
 0x431   :  { %v823_v42 = vadd.f32 %v822_v39, %v716_v41  ;;  %v3156_v45 = vadd.f32 %v878_v36, %v850_v40 }
 0x433   :  { %v892_v48 = vmax.f32 %v3156_v45, 0.0  ;;  %v1778_v45 = vld [vmem:[%s3620_s9 + $0xf8] sm:$0xff] }
 0x436   :  { %v851_v43 = vpop.f32.mrf.mxu1  ;;  %v880_v44 = vpop.f32.mrf.mxu0 }
 0x437   :  { %v852_v46 = vadd.f32 %v851_v43, %v823_v42 }
 0x438   :  { %v825_v2 = vpop.f32.mrf.mxu3 }
 0x439   :  { %v3158_v47 = vadd.f32 %v880_v44, %v852_v46 }
 0x43b   :  { %v893_v53 = vmax.f32 %v3158_v47, 0.0  ;;  %v1777_v47 = vld [vmem:[%s3620_s9 + $0xf0] sm:$0xff] }
 0x43d   :  { %v2625_v54 = vpack.i.bf16 %v893_v53, %v892_v48 }
 0x43e   :  { %v854_v3 = vpop.f32.mrf.mxu1  ;;  %v883_v9 = vpop.f32.mrf.mxu0 }
 0x43f   :  { %2626 = vrot.lane.b32.xlu2 %v2625_v54, %s2717_s1  ;;  %2636 = vrot.lane.b32.xlu1 %v2625_v54, %s2730_s16 }
 0x440   :  { %2631 = vrot.lane.b32.xlu0 %v2625_v54, %s2726_s28  ;;  %v827_v21 = vpop.f32.mrf.mxu3 }
 0x446   :  { %v856_v26 = vpop.f32.mrf.mxu1  ;;  %v885_v30 = vpop.f32.mrf.mxu0 }
 0x479   :  { %v2607_v1 = vpop.permute.xlu2 %2606 }
 0x47a   :  { %v2609_v62 = vunpack.i.h.bf16 %v2607_v1  ;;  %v2608_v5 = vunpack.i.l.bf16 %v2607_v1  ;;  %v1780_v1 = vld [vmem:[%s3620_s9 + $0x108] sm:$0xff] }
 0x489   :  { %v2612_v29 = vpop.permute.xlu2 %2611 }
 0x48a   :  { %v2614_v13 = vunpack.i.h.bf16 %v2612_v29 }
 0x48c   :  { %v947_v41 = vmax.f32 %v891_v34, %v2614_v13  ;;  %v1925_v13 = vld [vmem:[%s3620_s9 + $0x140] sm:$0xff] }
 0x491   :  { %v2602_v4 = vpop.permute.xlu1 %2601 }
 0x492   :  { %v2604_v61 = vunpack.i.h.bf16 %v2602_v4  ;;  %v2603_v7 = vunpack.i.l.bf16 %v2602_v4  ;;  %v2597_v8 = vpop.permute.xlu0 %2596  ;;  %v1558_v4 = vld [vmem:[%s3620_s9 + $0x90] sm:$0xff] }
 0x493   :  { %v2599_v10 = vunpack.i.h.bf16 %v2597_v8  ;;  %v2598_v6 = vunpack.i.l.bf16 %v2597_v8 }
 0x494   :  { %v953_v11 = vmax.f32 %v2604_v61, %v2609_v62  ;;  %v952_v12 = vmax.f32 %v2603_v7, %v2608_v5 }
 0x495   :  { %v945_v14 = vmax.f32 %v889_v18, %v2599_v10  ;;  %v944_v15 = vmax.f32 %v888_v17, %v2598_v6  ;;  %v2613_v18 = vunpack.i.l.bf16 %v2612_v29  ;;  %v1634_v6 = vld [vmem:[%s3620_s9 + $0xc8] sm:$0xff]  ;;  %v2515_v29 = vld [vmem:[%s3619_s8 + $0x78] sm:$0xff] }
 0x496   :  { %1227 = vmatpush.bf16.msrb.mxu1 %v2515_v29 }
 0x497   :  { %v961_v19 = vmax.f32 %v945_v14, %v953_v11  ;;  %v960_v20 = vmax.f32 %v944_v15, %v952_v12  ;;  %v946_v42 = vmax.f32 %v890_v33, %v2613_v18  ;;  %v1633_v11 = vld [vmem:[%s3620_s9 + $0xc0] sm:$0xff]  ;;  %v1851_v12 = vld [vmem:[%s3620_s9 + $0x118] sm:$0xff]  ;;  %v1853_v15 = vld [vmem:[%s3620_s9 + $0x128] sm:$0xff] }
 0x498   :  { %v1852_v14 = vld [vmem:[%s3620_s9 + $0x120] sm:$0xff]  ;;  %v2506_v18 = vld [vmem:[%s3619_s8 + $0x30] sm:$0xff] }
 0x499   :  { %v726_v22 = vpop.permute.xlu1 %725  ;;  %v968_v23 = vpack.c.bf16 %v961_v19, %v960_v20  ;;  %v2627_v33 = vpop.permute.xlu2 %2626  ;;  %v1465_v19 = vld [vmem:[%s3620_s9 + $0x78] sm:$0xff]  ;;  %v1464_v20 = vld [vmem:[%s3620_s9 + $0x70] sm:$0xff] }
 0x49a   :  { %v828_v24 = vadd.f32 %v827_v21, %v726_v22  ;;  %v721_v25 = vpop.permute.xlu0 %720  ;;  %v2629_v34 = vunpack.i.h.bf16 %v2627_v33  ;;  %v2628_v57 = vunpack.i.l.bf16 %v2627_v33  ;;  %v1850_v21 = vld [vmem:[%s3620_s9 + $0x110] sm:$0xff]  ;;  %v1705_v22 = vld [vmem:[%s3620_s9 + $0xd8] sm:$0xff] }
 0x49b   :  { %v826_v27 = vadd.f32 %v825_v2, %v721_v25  ;;  %1044 = vmatmul.bf16.vlgmr.msra.gmra.mxu2 %v968_v23  ;;  %v1466_v23 = vld [vmem:[%s3620_s9 + $0x80] sm:$0xff]  ;;  %v1707_v25 = vld [vmem:[%s3620_s9 + $0xe8] sm:$0xff]  ;;  %v2502_v33 = vld [vmem:[%s3619_s8 + $0x10] sm:$0xff] }
 0x49c   :  { %v857_v28 = vadd.f32 %v856_v26, %v828_v24  ;;  %v949_v62 = vmax.f32 %v893_v53, %v2629_v34  ;;  %v948_v5 = vmax.f32 %v892_v48, %v2628_v57  ;;  %v1631_v48 = vld [vmem:[%s3620_s9 + $0xb0] sm:$0xff]  ;;  %v1632_v53 = vld [vmem:[%s3620_s9 + $0xb8] sm:$0xff]  ;;  %v1706_v26 = vld [vmem:[%s3620_s9 + $0xe0] sm:$0xff] }
 0x49d   :  { %v855_v52 = vadd.f32 %v854_v3, %v826_v27  ;;  %v1704_v24 = vld [vmem:[%s3620_s9 + $0xd0] sm:$0xff]  ;;  %v1467_v27 = vld [vmem:[%s3620_s9 + $0x88] sm:$0xff] }
 0x49e   :  { %v3197_v51 = vadd.f32 %v885_v30, %v857_v28  ;;  %v2507_v28 = vld [vmem:[%s3619_s8 + $0x38] sm:$0xff]  ;;  %v2510_v34 = vld [vmem:[%s3619_s8 + $0x50] sm:$0xff] }
 0x49f   :  { %v3199_v16 = vadd.f32 %v883_v9, %v855_v52  ;;  %v2523_v30 = vld [vmem:[%s3619_s8 + $0xb8] sm:$0xff]  ;;  %1133 = vmatpush.bf16.msra.mxu3 %v2507_v28  ;;  %v2518_v57 = vld [vmem:[%s3619_s8 + $0x90] sm:$0xff]  ;;  %v3423_v28 = vld [vmem:[%s3622_s11] sm:$0xff] }
 0x4a0   :  { %v895_v17 = vmax.f32 %v3197_v51, 0.0  ;;  %v1924_v52 = vld [vmem:[%s3620_s9 + $0x138] sm:$0xff]  ;;  %1321 = vmatpush.bf16.msrb.mxu0 %v2523_v30 }
 0x4a1   :  { %v894_v50 = vmax.f32 %v3199_v16, 0.0  ;;  %v2622_v35 = vpop.permute.xlu1 %2621 }
 0x4a2   :  { %v2624_v49 = vunpack.i.h.bf16 %v2622_v35  ;;  %v2623_v36 = vunpack.i.l.bf16 %v2622_v35  ;;  %v2617_v37 = vpop.permute.xlu0 %2616  ;;  %v1926_v35 = vld [vmem:[%s3620_s9 + $0x148] sm:$0xff] }
 0x4a3   :  { %v2619_v38 = vunpack.i.h.bf16 %v2617_v37  ;;  %v2618_v39 = vunpack.i.l.bf16 %v2617_v37  ;;  %v2650_v40 = vpack.i.bf16 %v895_v17, %v894_v50  ;;  %1134 = vmatpush.bf16.msra.mxu3 %v2506_v18  ;;  %v2531_v37 = vld [vmem:[%s3619_s8 + $0xf8] sm:$0xff]  ;;  %v1551_v18 = vld [vmem:[%s3621_s10 + $0x8] sm:$0xff] }
 0x4a4   :  { %1415 = vmatpush.bf16.msrb.mxu2 %v2531_v37 }
 0x4a5   :  { %v955_v43 = vmax.f32 %v2619_v38, %v2624_v49  ;;  %v954_v44 = vmax.f32 %v2618_v39, %v2623_v36  ;;  %2651 = vrot.lane.b32.xlu1 %v2650_v40, %s2730_s16  ;;  %2646 = vrot.lane.b32.xlu0 %v2650_v40, %s2726_s28  ;;  %v2514_v49 = vld [vmem:[%s3619_s8 + $0x70] sm:$0xff]  ;;  %v2505_v38 = vld [vmem:[%s3619_s8 + $0x28] sm:$0xff] }
 0x4a6   :  { %2641 = vrot.lane.b32.xlu2 %v2650_v40, %s2717_s1  ;;  %v2522_v36 = vld [vmem:[%s3619_s8 + $0xb0] sm:$0xff]  ;;  %1228 = vmatpush.bf16.msrb.mxu1 %v2514_v49  ;;  %v2513_v39 = vld [vmem:[%s3619_s8 + $0x68] sm:$0xff] }
 0x4a7   :  { %v962_v46 = vmax.f32 %v946_v42, %v954_v44  ;;  %v963_v54 = vmax.f32 %v947_v41, %v955_v43  ;;  %1322 = vmatpush.bf16.msrb.mxu0 %v2522_v36  ;;  %v2521_v40 = vld [vmem:[%s3619_s8 + $0xa8] sm:$0xff]  ;;  %1135 = vmatpush.bf16.msra.mxu3 %v2505_v38  ;;  %v2530_v41 = vld [vmem:[%s3619_s8 + $0xf0] sm:$0xff]  ;;  %v2504_v43 = vld [vmem:[%s3619_s8 + $0x20] sm:$0xff] }
 0x4a8   :  { %v1923_v42 = vld [vmem:[%s3620_s9 + $0x130] sm:$0xff]  ;;  %v2512_v44 = vld [vmem:[%s3619_s8 + $0x60] sm:$0xff]  ;;  %1416 = vmatpush.bf16.msrb.mxu2 %v2530_v41 }
 0x4a9   :  { %v969_v55 = vpack.c.bf16 %v963_v54, %v962_v46  ;;  %v2520_v46 = vld [vmem:[%s3619_s8 + $0xa0] sm:$0xff]  ;;  %v2529_v54 = vld [vmem:[%s3619_s8 + $0xe8] sm:$0xff] }
 0x4aa   :  { %1229 = vmatpush.bf16.msrb.mxu1 %v2513_v39 }
 0x4ab   :  { %1049 = vmatmul.bf16.gmra.mxu2 %v969_v55  ;;  %1323 = vmatpush.bf16.msrb.mxu0 %v2521_v40  ;;  %v2503_v55 = vld [vmem:[%s3619_s8 + $0x18] sm:$0xff] }
 0x4ac   :  { %1136 = vmatpush.bf16.msra.mxu3 %v2504_v43  ;;  %1417 = vmatpush.bf16.msrb.mxu2 %v2529_v54 }
 0x4ad   :  { %1569 = vperm.xlu1 %2563, %v1559_v56   ;;  %1574 = vperm.xlu0 %2562, %v1560_v31   ;;  %v2511_v56 = vld [vmem:[%s3619_s8 + $0x58] sm:$0xff] }
 0x4ae   :  { %1579 = vperm.xlu2 %2564, %v1561_v32   ;;  %1230 = vmatpush.bf16.msrb.mxu1 %v2512_v44  ;;  %v2519_v31 = vld [vmem:[%s3619_s8 + $0x98] sm:$0xff]  ;;  %v2528_v32 = vld [vmem:[%s3619_s8 + $0xe0] sm:$0xff] }
 0x4af   :  { %1324 = vmatpush.bf16.msrb.mxu0 %v2520_v46 }
 0x4b0   :  { %1137 = vmatpush.bf16.msra.mxu3 %v2503_v55  ;;  %1418 = vmatpush.bf16.msrb.mxu2 %v2528_v32 }
 0x4b1   :  { %v2637_v58 = vpop.permute.xlu1 %2636 }
 0x4b2   :  { %v2639_v59 = vunpack.i.h.bf16 %v2637_v58  ;;  %v2638_v60 = vunpack.i.l.bf16 %v2637_v58  ;;  %v2632_v63 = vpop.permute.xlu0 %2631  ;;  %1231 = vmatpush.bf16.msrb.mxu1 %v2511_v56  ;;  %v2527_v58 = vld [vmem:[%s3619_s8 + $0xd8] sm:$0xff] }
 0x4b3   :  { %v2634_v2 = vunpack.i.h.bf16 %v2632_v63  ;;  %v2633_v3 = vunpack.i.l.bf16 %v2632_v63  ;;  %1325 = vmatpush.bf16.msrb.mxu0 %v2519_v31  ;;  %v2517_v63 = vld [vmem:[%s3619_s8 + $0x88] sm:$0xff] }
 0x4b4   :  { %1138 = vmatpush.bf16.msra.mxu3 %v2502_v33  ;;  %1419 = vmatpush.bf16.msrb.mxu2 %v2527_v58 }
 0x4b5   :  { %v957_v61 = vmax.f32 %v2634_v2, %v2639_v59  ;;  %v956_v7 = vmax.f32 %v2633_v3, %v2638_v60  ;;  %1793 = vperm.xlu1 %2563, %v1779_v0   ;;  %1798 = vperm.xlu0 %2562, %v1780_v1   ;;  %v2501_v59 = vld [vmem:[%s3619_s8 + $0x8] sm:$0xff]  ;;  %v2526_v0 = vld [vmem:[%s3619_s8 + $0xd0] sm:$0xff]  ;;  %v2500_v1 = vld [vmem:[%s3619_s8] sm:$0xff] }
 0x4b6   :  { %1564 = vperm.xlu2 %2564, %v1558_v4   ;;  %1232 = vmatpush.bf16.msrb.mxu1 %v2510_v34  ;;  %v2509_v60 = vld [vmem:[%s3619_s8 + $0x48] sm:$0xff]  ;;  %v2508_v2 = vld [vmem:[%s3619_s8 + $0x40] sm:$0xff] }
 0x4b7   :  { %v964_v8 = vmax.f32 %v948_v5, %v956_v7  ;;  %v965_v9 = vmax.f32 %v949_v62, %v957_v61  ;;  %1326 = vmatpush.bf16.msrb.mxu0 %v2518_v57  ;;  %v2516_v3 = vld [vmem:[%s3619_s8 + $0x80] sm:$0xff]  ;;  %v2525_v4 = vld [vmem:[%s3619_s8 + $0xc8] sm:$0xff] }
 0x4b8   :  { %1139 = vmatpush.bf16.msra.mxu3 %v2501_v59  ;;  %1420 = vmatpush.bf16.msrb.mxu2 %v2526_v0  ;;  %v2524_v62 = vld [vmem:[%s3619_s8 + $0xc0] sm:$0xff] }
 0x4b9   :  { %v970_v10 = vpack.c.bf16 %v965_v9, %v964_v8 }
 0x4ba   :  { %1233 = vmatpush.bf16.msrb.mxu1 %v2509_v60 }
 0x4bb   :  { %1054 = vmatmul.bf16.gmra.mxu2 %v970_v10  ;;  %1327 = vmatpush.bf16.msrb.mxu0 %v2517_v63 }
 0x4bc   :  { %1140 = vmatpush.bf16.msra.mxu3 %v2500_v1  ;;  %1421 = vmatpush.bf16.msrb.mxu2 %v2525_v4 }
 0x4bd   :  { %1652 = vperm.xlu1 %2563, %v1634_v6   ;;  %1783 = vperm.xlu0 %2562, %v1777_v47  }
 0x4be   :  { %1788 = vperm.xlu2 %2564, %v1778_v45   ;;  %1234 = vmatpush.bf16.msrb.mxu1 %v2508_v2 }
 0x4bf   :  { %1328 = vmatpush.bf16.msrb.mxu0 %v2516_v3 }
 0x4c0   :  { %1422 = vmatpush.bf16.msrb.mxu2 %v2524_v62 }
 0x4c5   :  { %1637 = vperm.xlu1 %2563, %v1631_v48   ;;  %1642 = vperm.xlu0 %2562, %v1632_v53  }
 0x4c6   :  { %1647 = vperm.xlu2 %2564, %v1633_v11  }
 0x4cd   :  { %1861 = vperm.xlu1 %2563, %v1851_v12   ;;  %1866 = vperm.xlu0 %2562, %v1852_v14  }
 0x4ce   :  { %1871 = vperm.xlu2 %2564, %v1853_v15  }
 0x4d5   :  { %1475 = vperm.xlu1 %2563, %v1465_v19   ;;  %1470 = vperm.xlu0 %2562, %v1464_v20  }
 0x4d6   :  { %1856 = vperm.xlu2 %2564, %v1850_v21  }
 0x4dd   :  { %1715 = vperm.xlu1 %2563, %v1705_v22   ;;  %1480 = vperm.xlu0 %2562, %v1466_v23  }
 0x4de   :  { %1710 = vperm.xlu2 %2564, %v1704_v24  }
 0x4e5   :  { %1725 = vperm.xlu1 %2563, %v1707_v25   ;;  %1720 = vperm.xlu0 %2562, %v1706_v26   ;;  %v3405_v25 = vld [vmem:[%s3622_s11 + $0x18] sm:$0xff]  ;;  %v3410_v26 = vld [vmem:[%s3622_s11 + $0x10] sm:$0xff] }
 0x4e6   :  { %1485 = vperm.xlu2 %2564, %v1467_v27   ;;  %1606 = vmatpush.msra.mxu0 %v3405_v25  ;;  %v3417_v27 = vld [vmem:[%s3622_s11 + $0x8] sm:$0xff] }
 0x4e8   :  { %1607 = vmatpush.msra.mxu0 %v3410_v26 }
 0x4ea   :  { %1608 = vmatpush.msra.mxu0 %v3417_v27 }
 0x4ec   :  { %1609 = vmatpush.msra.mxu0 %v3423_v28 }
 0x4ed   :  { %1934 = vperm.xlu1 %2563, %v1924_v52   ;;  %1939 = vperm.xlu0 %2562, %v1925_v13   ;;  %v1550_v13 = vld [vmem:[%s3621_s10] sm:$0xff] }
 0x4ee   :  { %1944 = vperm.xlu2 %2564, %v1926_v35   ;;  %v1552_v35 = vld [vmem:[%s3621_s10 + $0x10] sm:$0xff] }
 0x4f6   :  { %1929 = vperm.xlu2 %2564, %v1923_v42  }
 0x500   :  { %v2642_v5 = vpop.permute.xlu2 %2641 }
 0x501   :  { %v2644_v61 = vunpack.i.h.bf16 %v2642_v5  ;;  %v2643_v7 = vunpack.i.l.bf16 %v2642_v5 }
 0x503   :  { %v951_v48 = vmax.f32 %v895_v17, %v2644_v61  ;;  %v950_v53 = vmax.f32 %v894_v50, %v2643_v7 }
 0x517   :  { %v2652_v8 = vpop.permute.xlu1 %2651  ;;  %v2647_v9 = vpop.permute.xlu0 %2646 }
 0x518   :  { %v2654_v10 = vunpack.i.h.bf16 %v2652_v8  ;;  %v2653_v6 = vunpack.i.l.bf16 %v2652_v8  ;;  %v2649_v47 = vunpack.i.h.bf16 %v2647_v9  ;;  %v2648_v45 = vunpack.i.l.bf16 %v2647_v9 }
 0x51a   :  { %v959_v11 = vmax.f32 %v2649_v47, %v2654_v10  ;;  %v958_v12 = vmax.f32 %v2648_v45, %v2653_v6 }
 0x51c   :  { %v966_v14 = vmax.f32 %v950_v53, %v958_v12  ;;  %v967_v15 = vmax.f32 %v951_v48, %v959_v11 }
 0x51e   :  { %v1045_v19 = vpop.f32.mrf.mxu2  ;;  %v971_v20 = vpack.c.bf16 %v967_v15, %v966_v14 }
 0x520   :  { %1059 = vmatmul.bf16.gmra.mxu2 %v971_v20  ;;  %v2533_v20 = vld [vmem:[%s3615_s4 + $0x4] sm:$0xf0] }
 0x526   :  { %v1047_v21 = vpop.f32.mrf.mxu2 }
 0x527   :  { %v1065_v22 = vpack.c.bf16 %v1047_v21, %v1045_v19  ;;  %v2424_v19 = vld [vmem:[%s3615_s4] sm:$0xf] }
 0x529   :  { %1141 = vmatmul.bf16.vlgmr.msra.gmra.mxu3 %v1065_v22  ;;  %1235 = vmatmul.bf16.vlgmr.msrb.gmra.mxu1 %v1065_v22 }
 0x52a   :  { %1329 = vmatmul.bf16.vlgmr.msrb.gmra.mxu0 %v1065_v22 }
 0x52e   :  { %v1050_v23 = vpop.f32.mrf.mxu2 }
 0x530   :  { %1423 = vmatmul.bf16.vlgmr.msrb.gmra.mxu2 %v1065_v22 }
 0x536   :  { %v1052_v24 = vpop.f32.mrf.mxu2 }
 0x537   :  { %v1066_v51 = vpack.c.bf16 %v1052_v24, %v1050_v23  ;;  %v2425_v23 = vor.u32 %v2533_v20, %v2424_v19  ;;  %v1769_v19 = vld [vmem:[%s3621_s10 + $0x60] sm:$0xff]  ;;  %v1630_v20 = vld [vmem:[%s3621_s10 + $0x38] sm:$0xff] }
 0x539   :  { %1146 = vmatmul.bf16.gmra.mxu3 %v1066_v51  ;;  %1240 = vmatmul.bf16.gmra.mxu1 %v1066_v51 }
 0x53a   :  { %1334 = vmatmul.bf16.gmra.mxu0 %v1066_v51 }
 0x53e   :  { %v1055_v16 = vpop.f32.mrf.mxu2 }
 0x540   :  { %1428 = vmatmul.bf16.gmra.mxu2 %v1066_v51  ;;  %v2532_v51 = vld [vmem:[%s3615_s4 + $0x4] sm:$0xf] }
 0x546   :  { %v1057_v17 = vpop.f32.mrf.mxu2 }
 0x547   :  { %v1067_v50 = vpack.c.bf16 %v1057_v17, %v1055_v16  ;;  %v2426_v16 = vld [vmem:[%s3615_s4 + $0x8] sm:$0xf0] }
 0x549   :  { %1151 = vmatmul.bf16.gmra.mxu3 %v1067_v50  ;;  %1245 = vmatmul.bf16.gmra.mxu1 %v1067_v50 }
 0x54a   :  { %1339 = vmatmul.bf16.gmra.mxu0 %v1067_v50 }
 0x550   :  { %1433 = vmatmul.bf16.gmra.mxu2 %v1067_v50  ;;  %v2429_v50 = vor.u32 %v2532_v51, %v2426_v16 }
 0x5a3   :  { %v1060_v29 = vpop.f32.mrf.mxu2 }
 0x5a6   :  { %v1236_v49 = vpop.f32.mrf.mxu1 }
 0x5a7   :  { %v3438_v40 = vpop.f32.mrf.mxu0 }
 0x5ab   :  { %v1062_v30 = vpop.f32.mrf.mxu2 }
 0x5ac   :  { %v1068_v52 = vpack.c.bf16 %v1062_v30, %v1060_v29  ;;  %v1142_v38 = vpop.f32.mrf.mxu3  ;;  %v2535_v29 = vld [vmem:[%s3615_s4 + $0x14] sm:$0xf0] }
 0x5ae   :  { %1156 = vmatmul.bf16.gmra.mxu3 %v1068_v52  ;;  %1250 = vmatmul.bf16.gmra.mxu1 %v1068_v52  ;;  %v1238_v37 = vpop.f32.mrf.mxu1 }
 0x5af   :  { %1344 = vmatmul.bf16.gmra.mxu0 %v1068_v52  ;;  %1438 = vmatmul.bf16.gmra.mxu2 %v1068_v52  ;;  %v3440_v44 = vpop.f32.mrf.mxu0  ;;  %v1448_v6 = vpack.c.bf16 %v1238_v37, %v1236_v49  ;;  %v1553_v52 = vld [vmem:[%s3621_s10 + $0x18] sm:$0xff] }
 0x5b0   :  { %v1452_v17 = vpack.c.bf16 %v3440_v44, %v3438_v40 }
 0x5b3   :  { %v1424_v36 = vpop.f32.mrf.mxu2 }
 0x5b4   :  { %v1144_v42 = vpop.f32.mrf.mxu3 }
 0x5b5   :  { %v1444_v22 = vpack.c.bf16 %v1144_v42, %v1142_v38 }
 0x5b6   :  { %v1241_v41 = vpop.f32.mrf.mxu1 }
 0x5b7   :  { %v1335_v56 = vpop.f32.mrf.mxu0 }
 0x5bb   :  { %v1426_v39 = vpop.f32.mrf.mxu2 }
 0x5bc   :  { %v1147_v54 = vpop.f32.mrf.mxu3  ;;  %v1456_v53 = vpack.c.bf16 %v1426_v39, %v1424_v36 }
 0x5be   :  { %v1243_v46 = vpop.f32.mrf.mxu1 }
 0x5bf   :  { %2438 = vmatmul.msk.f32.vlgmr.msra.gmra.mxu0 %vm788_vm4, %v1550_v13  ;;  %v1337_v34 = vpop.f32.mrf.mxu0  ;;  %v1449_v8 = vpack.c.bf16 %v1243_v46, %v1241_v41  ;;  %v1575_v13 = vpop.permute.xlu0 %1574 }
 0x5c0   :  { %v1453_v24 = vpack.c.bf16 %v1337_v34, %v1335_v56 }
 0x5c3   :  { %v1429_v43 = vpop.f32.mrf.mxu2 }
 0x5c4   :  { %v1149_v32 = vpop.f32.mrf.mxu3 }
 0x5c5   :  { %v1445_v15 = vpack.c.bf16 %v1149_v32, %v1147_v54 }
 0x5c6   :  { %v1246_v31 = vpop.f32.mrf.mxu1 }
 0x5c7   :  { %2439 = vmatmul.msk.f32.gmra.mxu0 %vm788_vm4, %v1551_v18  ;;  %v1340_v63 = vpop.f32.mrf.mxu0  ;;  %v1570_v18 = vpop.permute.xlu1 %1569 }
 0x5cb   :  { %v1431_v55 = vpop.f32.mrf.mxu2 }
 0x5cc   :  { %v1152_v58 = vpop.f32.mrf.mxu3  ;;  %v1457_v45 = vpack.c.bf16 %v1431_v55, %v1429_v43 }
 0x5ce   :  { %v1248_v57 = vpop.f32.mrf.mxu1 }
 0x5cf   :  { %2440 = vmatmul.msk.f32.gmra.mxu0 %vm788_vm4, %v1552_v35  ;;  %v1342_v4 = vpop.f32.mrf.mxu0  ;;  %v1450_v5 = vpack.c.bf16 %v1248_v57, %v1246_v31  ;;  %v3476_v35 = vpop.permute.xlu0 %1798 }
 0x5d0   :  { %v1454_v21 = vpack.c.bf16 %v1342_v4, %v1340_v63  ;;  %v3478_v49 = vpop.permute.xlu1 %1793 }
 0x5d3   :  { %v1434_v33 = vpop.f32.mrf.mxu2 }
 0x5d4   :  { %v1154_v0 = vpop.f32.mrf.mxu3 }
 0x5d5   :  { %v1446_v11 = vpack.c.bf16 %v1154_v0, %v1152_v58 }
 0x5d7   :  { %v3480_v36 = vpop.permute.xlu0 %1783 }
 0x5d8   :  { %v3482_v37 = vpop.permute.xlu1 %1652 }
 0x5db   :  { %v1436_v59 = vpop.f32.mrf.mxu2 }
 0x5dc   :  { %v1458_v10 = vpack.c.bf16 %v1436_v59, %v1434_v33 }
 0x5df   :  { %v3484_v38 = vpop.permute.xlu0 %1642 }
 0x5e0   :  { %v3486_v39 = vpop.permute.xlu1 %1637 }
 0x5e7   :  { %v3488_v40 = vpop.permute.xlu0 %1866 }
 0x5e8   :  { %v3490_v41 = vpop.permute.xlu1 %1861 }
 0x5ef   :  { %v1471_v42 = vpop.permute.xlu0 %1470 }
 0x5f0   :  { %v1476_v55 = vpop.permute.xlu1 %1475 }
 0x5f7   :  { %v1481_v57 = vpop.permute.xlu0 %1480 }
 0x62b   :  { %v1251_v60 = vpop.f32.mrf.mxu1 }
 0x62c   :  { %v1345_v9 = vpop.f32.mrf.mxu0 }
 0x631   :  { %v1157_v62 = vpop.f32.mrf.mxu3 }
 0x632   :  { %v1439_v1 = vpop.f32.mrf.mxu2 }
 0x633   :  { %v1253_v2 = vpop.f32.mrf.mxu1 }
 0x634   :  { %v1451_v3 = vpack.c.bf16 %v1253_v2, %v1251_v60  ;;  %v1347_v12 = vpop.f32.mrf.mxu0  ;;  %v1580_v2 = vpop.permute.xlu2 %1579 }
 0x635   :  { %v1455_v14 = vpack.c.bf16 %v1347_v12, %v1345_v9  ;;  %v1774_v12 = vld [vmem:[%s3623_s12 + $0x8] sm:$0xff] }
 0x636   :  { %1508 = vmatpush.bf16.msrb.mxu3 %v1451_v3 }
 0x639   :  { %v1159_v47 = vpop.f32.mrf.mxu3 }
 0x63a   :  { %v1441_v61 = vpop.f32.mrf.mxu2  ;;  %1509 = vmatpush.bf16.msrb.mxu3 %v1450_v5  ;;  %v1447_v48 = vpack.c.bf16 %v1159_v47, %v1157_v62 }
 0x63b   :  { %v1459_v7 = vpack.c.bf16 %v1441_v61, %v1439_v1 }
 0x63c   :  { %v1611_v33 = vpop.f32.mrf.mxu0 }
 0x63d   :  { %1527 = vmatpush.bf16.msra.mxu1 %v1459_v7 }
 0x63e   :  { %1510 = vmatpush.bf16.msrb.mxu3 %v1449_v8  ;;  %v1565_v8 = vpop.permute.xlu2 %1564 }
 0x63f   :  { %v1612_v9 = vadd.f32 %v1611_v33, %v1565_v8 }
 0x641   :  { %1528 = vmatpush.bf16.msra.mxu1 %v1458_v10  ;;  %v1623_v47 = vmax.f32 %v1612_v9, 0.0  ;;  %v1716_v9 = vpop.permute.xlu1 %1715 }
 0x642   :  { %1511 = vmatpush.bf16.msrb.mxu3 %v1448_v6 }
 0x644   :  { %v1614_v0 = vpop.f32.mrf.mxu0 }
 0x645   :  { %1529 = vmatpush.bf16.msra.mxu1 %v1457_v45  ;;  %v1615_v61 = vadd.f32 %v1614_v0, %v1570_v18  ;;  %v1627_v45 = vld [vmem:[%s3621_s10 + $0x20] sm:$0xff]  ;;  %v1848_v0 = vld [vmem:[%s3621_s10 + $0x90] sm:$0xff] }
 0x646   :  { %1512 = vmatpush.bf16.msrb.mxu3 %v1447_v48  ;;  %v1628_v48 = vld [vmem:[%s3621_s10 + $0x28] sm:$0xff] }
 0x647   :  { %v1624_v6 = vmax.f32 %v1615_v61, 0.0 }
 0x649   :  { %1530 = vmatpush.bf16.msra.mxu1 %v1456_v53  ;;  %v1776_v53 = vld [vmem:[%s3623_s12 + $0x18] sm:$0xff] }
 0x64a   :  { %1513 = vmatpush.bf16.msrb.mxu3 %v1446_v11  ;;  %v1775_v11 = vld [vmem:[%s3623_s12 + $0x10] sm:$0xff] }
 0x64c   :  { %v1617_v3 = vpop.f32.mrf.mxu0 }
 0x64d   :  { %1531 = vmatpush.bf16.msra.mxu1 %v1455_v14  ;;  %v1618_v62 = vadd.f32 %v1617_v3, %v1575_v13  ;;  %v1773_v14 = vld [vmem:[%s3623_s12] sm:$0xff] }
 0x64e   :  { %1514 = vmatpush.bf16.msrb.mxu3 %v1445_v15  ;;  %v1629_v15 = vld [vmem:[%s3621_s10 + $0x30] sm:$0xff] }
 0x64f   :  { %v1625_v10 = vmax.f32 %v1618_v62, 0.0 }
 0x651   :  { %1532 = vmatpush.bf16.msra.mxu1 %v1454_v21  ;;  %v1770_v21 = vld [vmem:[%s3621_s10 + $0x68] sm:$0xff] }
 0x652   :  { %1515 = vmatpush.bf16.msrb.mxu3 %v1444_v22  ;;  %v1771_v22 = vld [vmem:[%s3621_s10 + $0x70] sm:$0xff] }
 0x655   :  { %1533 = vmatpush.bf16.msra.mxu1 %v1453_v24  ;;  %1516 = vmatmul.bf16.vlgmr.msrb.gmra.mxu3 %v2425_v23  ;;  %v1772_v23 = vld [vmem:[%s3621_s10 + $0x78] sm:$0xff] }
 0x656   :  { %2536 = vmatpush.msra.mxu3 %v3405_v25  ;;  %v2432_v25 = vld [vmem:[%s3615_s4 + $0x10] sm:$0xf] }
 0x657   :  { %v2433_v30 = vor.u32 %v2535_v29, %v2432_v25 }
 0x658   :  { %2537 = vmatpush.msra.mxu3 %v3410_v26  ;;  %v2534_v26 = vld [vmem:[%s3615_s4 + $0x14] sm:$0xf] }
 0x659   :  { %1534 = vmatpush.bf16.msra.mxu1 %v1452_v17 }
 0x65a   :  { %2538 = vmatpush.msra.mxu3 %v3417_v27  ;;  %v2434_v27 = vld [vmem:[%s3615_s4 + $0x18] sm:$0xf0] }
 0x65c   :  { %2539 = vmatpush.msra.mxu3 %v3423_v28  ;;  %1535 = vmatmul.bf16.vlgmr.msra.gmra.mxu1 %v2429_v50  ;;  %v2437_v28 = vor.u32 %v2534_v26, %v2434_v27  ;;  %v1789_v50 = vpop.permute.xlu2 %1788 }
 0x665   :  { %1521 = vmatmul.bf16.gmra.mxu3 %v2433_v30  ;;  %v1648_v30 = vpop.permute.xlu2 %1647 }
 0x66c   :  { %1540 = vmatmul.bf16.gmra.mxu1 %v2437_v28 }
 0x66d   :  { %v1872_v3 = vpop.permute.xlu2 %1871 }
 0x675   :  { %2441 = vmatmul.msk.f32.vlgmr.msra.gmra.mxu3 %vm788_vm4, %v1553_v52 }
 0x6d8   :  { %v1517_v43 = vpop.f32.mrf.mxu3 }
 0x6d9   :  { %v1518_v44 = vadd.f32 %v1517_v43, %v1471_v42  ;;  %v1536_v46 = vpop.f32.mrf.mxu1 }
 0x6db   :  { %v3492_v54 = vadd.f32 %v1536_v46, %v1518_v44 }
 0x6dd   :  { %v1546_v61 = vmax.f32 %v3492_v54, 0.0 }
 0x6e0   :  { %v1519_v56 = vpop.f32.mrf.mxu3 }
 0x6e1   :  { %v1520_v31 = vadd.f32 %v1519_v56, %v1476_v55  ;;  %v1538_v32 = vpop.f32.mrf.mxu1  ;;  %v1700_v55 = vld [vmem:[%s3621_s10 + $0x40] sm:$0xff] }
 0x6e3   :  { %v3494_v34 = vadd.f32 %v1538_v32, %v1520_v31  ;;  %v1701_v32 = vld [vmem:[%s3621_s10 + $0x48] sm:$0xff] }
 0x6e8   :  { %v1522_v58 = vpop.f32.mrf.mxu3 }
 0x6e9   :  { %v1523_v59 = vadd.f32 %v1522_v58, %v1481_v57  ;;  %v1541_v60 = vpop.f32.mrf.mxu1  ;;  %v1846_v57 = vld [vmem:[%s3621_s10 + $0x80] sm:$0xff]  ;;  %v1702_v58 = vld [vmem:[%s3621_s10 + $0x50] sm:$0xff] }
 0x6eb   :  { %v3496_v63 = vadd.f32 %v1541_v60, %v1523_v59  ;;  %v1847_v59 = vld [vmem:[%s3621_s10 + $0x88] sm:$0xff]  ;;  %v1703_v60 = vld [vmem:[%s3621_s10 + $0x58] sm:$0xff] }
 0x6f0   :  { %v3498_v1 = vpop.f32.mrf.mxu3 }
 0x6f1   :  { %v3544_v24 = vpop.f32.mrf.mxu1 }
 0x6f8   :  { %v1620_v4 = vpop.f32.mrf.mxu3 }
 0x6f9   :  { %v1621_v5 = vadd.f32 %v1620_v4, %v1580_v2  ;;  %v1849_v2 = vld [vmem:[%s3621_s10 + $0x98] sm:$0xff]  ;;  %v1857_v4 = vpop.permute.xlu2 %1856 }
 0x6fb   :  { %v1626_v7 = vmax.f32 %v1621_v5, 0.0 }
 0x6fd   :  { %1679 = vmatpush.msrb.mxu1 %v1626_v7  ;;  %2540 = vmatpush.msra.mxu2 %v1626_v7 }
 0x6ff   :  { %1680 = vmatpush.msrb.mxu1 %v1625_v10  ;;  %2541 = vmatpush.msra.mxu2 %v1625_v10 }
 0x701   :  { %1681 = vmatpush.msrb.mxu1 %v1624_v6  ;;  %2542 = vmatpush.msra.mxu2 %v1624_v6  ;;  %v1711_v62 = vpop.permute.xlu2 %1710  ;;  %v1547_v6 = vmax.f32 %v3494_v34, 0.0 }
 0x703   :  { %1682 = vmatpush.msrb.mxu1 %v1623_v47  ;;  %2543 = vmatpush.msra.mxu2 %v1623_v47 }
 0x704   :  { %2442 = vmatmul.msk.f32.vlgmr.msrb.gmra.mxu1 %vm788_vm4, %v1627_v45  ;;  %2443 = vmatmul.msk.f32.vlgmr.msra.gmra.mxu2 %vm788_vm4, %v1628_v48 }
 0x705   :  { %1825 = vmatpush.msra.mxu1 %v1776_v53 }
 0x707   :  { %1826 = vmatpush.msra.mxu1 %v1775_v11  ;;  %v1721_v11 = vpop.permute.xlu0 %1720 }
 0x709   :  { %1827 = vmatpush.msra.mxu1 %v1774_v12  ;;  %v1486_v53 = vpop.permute.xlu2 %1485 }
 0x70b   :  { %1828 = vmatpush.msra.mxu1 %v1773_v14  ;;  %v1548_v14 = vmax.f32 %v3496_v63, 0.0 }
 0x70c   :  { %2444 = vmatmul.msk.f32.gmra.mxu2 %vm788_vm4, %v1629_v15  ;;  %2450 = vmatmul.msk.f32.vlgmr.msra.gmra.mxu1 %vm788_vm4, %v1769_v19  ;;  %v1525_v15 = vadd.f32 %v3498_v1, %v1486_v53 }
 0x714   :  { %2445 = vmatmul.msk.f32.gmra.mxu2 %vm788_vm4, %v1630_v20  ;;  %2451 = vmatmul.msk.f32.gmra.mxu1 %vm788_vm4, %v1770_v21  ;;  %v1544_v21 = vadd.f32 %v3544_v24, %v1525_v15 }
 0x716   :  { %v1549_v34 = vmax.f32 %v1544_v21, 0.0 }
 0x71c   :  { %2452 = vmatmul.msk.f32.gmra.mxu1 %vm788_vm4, %v1771_v22  ;;  %v1726_v22 = vpop.permute.xlu1 %1725 }
 0x724   :  { %2453 = vmatmul.msk.f32.gmra.mxu1 %vm788_vm4, %v1772_v23 }
 0x781   :  { %v1684_v51 = vpop.f32.mrf.mxu1 }
 0x782   :  { %v1685_v42 = vadd.f32 %v1684_v51, %v3486_v39 }
 0x784   :  { %v1696_v46 = vmax.f32 %v1685_v42, 0.0 }
 0x787   :  { %v1687_v16 = vpop.f32.mrf.mxu2 }
 0x788   :  { %v1688_v13 = vadd.f32 %v1687_v16, %v3484_v38 }
 0x789   :  { %v1830_v17 = vpop.f32.mrf.mxu1 }
 0x78a   :  { %v1697_v44 = vmax.f32 %v1688_v13, 0.0  ;;  %v1831_v39 = vadd.f32 %v1830_v17, %v3480_v36 }
 0x78f   :  { %v1690_v25 = vpop.f32.mrf.mxu2 }
 0x790   :  { %v1691_v27 = vadd.f32 %v1690_v25, %v1648_v30 }
 0x791   :  { %v1833_v29 = vpop.f32.mrf.mxu1 }
 0x792   :  { %v1698_v43 = vmax.f32 %v1691_v27, 0.0  ;;  %v1834_v38 = vadd.f32 %v1833_v29, %v1789_v50  ;;  %v1919_v27 = vld [vmem:[%s3621_s10 + $0xa0] sm:$0xff] }
 0x797   :  { %v1693_v26 = vpop.f32.mrf.mxu2 }
 0x798   :  { %v1694_v28 = vadd.f32 %v1693_v26, %v3482_v37 }
 0x799   :  { %v1836_v52 = vpop.f32.mrf.mxu1 }
 0x79a   :  { %v1699_v18 = vmax.f32 %v1694_v28, 0.0  ;;  %v1837_v31 = vadd.f32 %v1836_v52, %v3478_v49  ;;  %v1922_v52 = vld [vmem:[%s3621_s10 + $0xb8] sm:$0xff] }
 0x79c   :  { %1752 = vmatpush.msrb.mxu3 %v1699_v18 }
 0x79e   :  { %1753 = vmatpush.msrb.mxu3 %v1698_v43  ;;  %v1945_v43 = vpop.permute.xlu2 %1944 }
 0x7a0   :  { %1754 = vmatpush.msrb.mxu3 %v1697_v44  ;;  %v1940_v44 = vpop.permute.xlu0 %1939 }
 0x7a1   :  { %v1839_v56 = vpop.f32.mrf.mxu1 }
 0x7a2   :  { %v1840_v37 = vadd.f32 %v1839_v56, %v3476_v35  ;;  %1755 = vmatpush.msrb.mxu3 %v1696_v46 }
 0x7a3   :  { %2446 = vmatmul.msk.f32.vlgmr.msrb.gmra.mxu3 %vm788_vm4, %v1700_v55 }
 0x7a4   :  { %2673 = vtanh.f32 %v1840_v37 }
 0x7a5   :  { %2675 = vtanh.f32 %v1837_v31  ;;  %v1935_v31 = vpop.permute.xlu1 %1934 }
 0x7a6   :  { %2677 = vtanh.f32 %v1834_v38  ;;  %v1930_v38 = vpop.permute.xlu2 %1929 }
 0x7a7   :  { %2679 = vtanh.f32 %v1831_v39 }
 0x7aa   :  { %v2674_v33 = vpop.eup %2673 }
 0x7ab   :  { %2447 = vmatmul.msk.f32.gmra.mxu3 %vm788_vm4, %v1701_v32  ;;  %1898 = vmatpush.msrb.mxu0 %v2674_v33  ;;  %v2676_v49 = vpop.eup %2675 }
 0x7ac   :  { %v2678_v35 = vpop.eup %2677 }
 0x7ad   :  { %1899 = vmatpush.msrb.mxu0 %v2676_v49  ;;  %v2680_v36 = vpop.eup %2679 }
 0x7af   :  { %1900 = vmatpush.msrb.mxu0 %v2678_v35 }
 0x7b1   :  { %1901 = vmatpush.msrb.mxu0 %v2680_v36 }
 0x7b2   :  { %2454 = vmatmul.msk.f32.vlgmr.msrb.gmra.mxu0 %vm788_vm4, %v1846_v57 }
 0x7b3   :  { %2448 = vmatmul.msk.f32.gmra.mxu3 %vm788_vm4, %v1702_v58 }
 0x7ba   :  { %2455 = vmatmul.msk.f32.gmra.mxu0 %vm788_vm4, %v1847_v59 }
 0x7bb   :  { %2449 = vmatmul.msk.f32.gmra.mxu3 %vm788_vm4, %v1703_v60 }
 0x7c2   :  { %2456 = vmatmul.msk.f32.gmra.mxu0 %vm788_vm4, %v1848_v0 }
 0x7ca   :  { %2457 = vmatmul.msk.f32.gmra.mxu0 %vm788_vm4, %v1849_v2 }
 0x826   :  { %v1757_v5 = vpop.f32.mrf.mxu3 }
 0x827   :  { %v1758_v7 = vadd.f32 %v1757_v5, %v1711_v62 }
 0x829   :  { %v1988_v8 = vmul.f32 %v1758_v7, %v1546_v61 }
 0x82b   :  { %1992 = vxpose.xlu0.b32.start [1/4] (short) (narrow) %v1988_v8, 8 }
 0x82e   :  { %v1760_v10 = vpop.f32.mrf.mxu3 }
 0x82f   :  { %v1761_v47 = vadd.f32 %v1760_v10, %v1716_v9  ;;  %v1903_v45 = vpop.f32.mrf.mxu0 }
 0x830   :  { %v1904_v1 = vadd.f32 %v1903_v45, %v1857_v4 }
 0x831   :  { %v1989_v48 = vmul.f32 %v1761_v47, %v1547_v6 }
 0x833   :  { %1993 = vxpose.xlu0.b32.cont [2/4] (short) (narrow) %v1989_v48, 8 }
 0x836   :  { %v1763_v12 = vpop.f32.mrf.mxu3 }
 0x837   :  { %v1764_v19 = vadd.f32 %v1763_v12, %v1721_v11  ;;  %v1906_v54 = vpop.f32.mrf.mxu0 }
 0x838   :  { %v1907_v63 = vadd.f32 %v1906_v54, %v3490_v41  ;;  %v1921_v41 = vld [vmem:[%s3621_s10 + $0xb0] sm:$0xff] }
 0x839   :  { %v1990_v20 = vmul.f32 %v1764_v19, %v1548_v14 }
 0x83b   :  { %1994 = vxpose.xlu0.b32.cont [3/4] (short) (narrow) %v1990_v20, 8 }
 0x83e   :  { %v1766_v23 = vpop.f32.mrf.mxu3 }
 0x83f   :  { %v1767_v51 = vadd.f32 %v1766_v23, %v1726_v22  ;;  %v1909_v16 = vpop.f32.mrf.mxu0 }
 0x840   :  { %v1910_v25 = vadd.f32 %v1909_v16, %v3488_v40  ;;  %v1920_v40 = vld [vmem:[%s3621_s10 + $0xa8] sm:$0xff]  ;;  %s2731_s10 = smov [#allocation2]  }
 0x841   :  { %v1991_v17 = vmul.f32 %v1767_v51, %v1549_v34  ;;  %s2054_s12 = sshll.u32 %s2731_s10, 4  ;;  %s2055_s12 = int_to_ptr.vmem [resolvable:$true] %s2054_s12 }
 0x843   :  { %1995 = vxpose.xlu0.b32.end [4/4] (short) (narrow) %v1991_v17, 8 }
 0x847   :  { %v1912_v50 = vpop.f32.mrf.mxu0 }
 0x848   :  { %v1913_v29 = vadd.f32 %v1912_v50, %v1872_v3 }
 0x84a   :  { %2681 = vtanh.f32 %v1913_v29 }
 0x84b   :  { %2683 = vtanh.f32 %v1910_v25 }
 0x84c   :  { %2685 = vtanh.f32 %v1907_v63 }
 0x84d   :  { %2687 = vtanh.f32 %v1904_v1 }
 0x850   :  { %v2682_v30 = vpop.eup %2681 }
 0x851   :  { %1971 = vmatpush.msrb.mxu2 %v2682_v30  ;;  %v2684_v24 = vpop.eup %2683 }
 0x852   :  { %v2686_v26 = vpop.eup %2685 }
 0x853   :  { %1972 = vmatpush.msrb.mxu2 %v2684_v24  ;;  %v2688_v28 = vpop.eup %2687 }
 0x855   :  { %1973 = vmatpush.msrb.mxu2 %v2686_v26 }
 0x857   :  { %1974 = vmatpush.msrb.mxu2 %v2688_v28 }
 0x858   :  { %2458 = vmatmul.msk.f32.vlgmr.msrb.gmra.mxu2 %vm788_vm4, %v1919_v27 }
 0x860   :  { %2459 = vmatmul.msk.f32.gmra.mxu2 %vm788_vm4, %v1920_v40 }
 0x868   :  { %2460 = vmatmul.msk.f32.gmra.mxu2 %vm788_vm4, %v1921_v41 }
 0x870   :  { %2461 = vmatmul.msk.f32.gmra.mxu2 %vm788_vm4, %v1922_v52 }
 0x8cf   :  { %v2008_v32 = vpop.trf.xlu0 }
 0x8db   :  { %v1976_v13 = vpop.f32.mrf.mxu2 }
 0x8dc   :  { %v1977_v39 = vadd.f32 %v1976_v13, %v1930_v38 }
 0x8e3   :  { %v1979_v18 = vpop.f32.mrf.mxu2 }
 0x8e4   :  { %v1980_v37 = vadd.f32 %v1979_v18, %v1935_v31 }
 0x8eb   :  { %v1982_v42 = vpop.f32.mrf.mxu2 }
 0x8ec   :  { %v1983_v56 = vadd.f32 %v1982_v42, %v1940_v44 }
 0x8f3   :  { %v1985_v46 = vpop.f32.mrf.mxu2 }
 0x8f4   :  { %v1986_v55 = vadd.f32 %v1985_v46, %v1945_v43 }
 0x8f6   :  { %2039 = vmatpush.msra.mxu3 %v1986_v55 }
 0x8f8   :  { %2040 = vmatpush.msra.mxu3 %v1983_v56 }
 0x8fa   :  { %2041 = vmatpush.msra.mxu3 %v1980_v37 }
 0x8fc   :  { %2042 = vmatpush.msra.mxu3 %v1977_v39 }
 0x8fd   :  { %2462 = vmatmul.msk.f32.vlgmr.msra.gmra.mxu3 %vm788_vm4, %v2008_v32 }
 0x980   :  { %v2044_v33 = vpop.f32.mrf.mxu3 }
 0x981   :  { %2048 = vst.msk [vmem:[#allocation2] sm:$0x3] %vm2047_vm5, %v2044_v33 }
 0x982   :  { %2059 = dma.vmem_to_hbm [thread:$0]  %s2055_s12, 32, %s2057_s5, [#allocation3]  }
 0x983   :  { %2713 = dma.done.wait [#allocation3], 32  }
 0x984   :  { %2714 = vsyncadd [#allocation3], 4294967264 }
 0x985   :  { %2064 = vsyncpa [#allocation3], 1 }

</bundles_post_ra>
